<compile_context>
chip_gen: v7x
topology: tpu7x:2x2x1
jax: 0.10.0
libtpu: 0.0.40
codegen_flags: <defaults>
</compile_context>

<pallas_src>
import math
import functools

import numpy as np
import jax
import jax.numpy as jnp
from jax.experimental import pallas as pl
from jax.experimental.pallas import tpu as pltpu


# ----------------------------------------------------------------------------
# Pallas kernel: per-sample log mixture density (before the scalar prior term)
# ----------------------------------------------------------------------------
def _gmm_logdensity_kernel(x_ref, a1_ref, a2_ref, c_ref, out_ref, *,
                           compute_dtype, square_in_f32, fused, precision):
    # x_ref:   (tile_n, D) natural-layout sample block (straight from HBM)
    # a1_ref:  (Kp, D)  -w              where w = 0.5 * exp(neglogvar) = 1/(2*cov)
    # a2_ref:  (Kp, D)  2 * mean * w
    # c_ref:   (Kp, 1)  per-component constant (padded components = -inf), f32
    # out_ref: (1, tile_n)  logsumexp over components (lane-dense output)
    nt_dims = (((1,), (1,)), ((), ()))    # contract the shared (minor) D axis: A @ X^T

    x = x_ref[...]
    if square_in_f32:
        # v5e VPU has no bf16 path: square in f32, cast once for the MXU operands.
        xf = x.astype(jnp.float32)
        xsq = (xf * xf).astype(compute_dtype)
        xin = xf.astype(compute_dtype)
    else:
        # v6e/v7x: single cast, square directly in bf16 (halves VPU/vreg cost).
        xin = x.astype(compute_dtype)
        xsq = xin * xin

    if fused:
        # One MXU contraction of depth 2*D:  y[k, n] = [-w_k ; 2 mu_k w_k] . [x_n^2 ; x_n]
        acat = jnp.concatenate([a1_ref[...], a2_ref[...]], axis=1)    # (Kp, 2D), tiny
        xcat = jnp.concatenate([xsq, xin], axis=1)                    # (tile_n, 2D)
        y = jax.lax.dot_general(acat, xcat, nt_dims,
                                preferred_element_type=jnp.float32,
                                precision=precision)                  # (Kp, tile_n)
    else:
        # Fallback for Mosaic versions without unaligned lane concatenation.
        y = jax.lax.dot_general(a1_ref[...], xsq, nt_dims,
                                preferred_element_type=jnp.float32,
                                precision=precision)
        y = y + jax.lax.dot_general(a2_ref[...], xin, nt_dims,
                                    preferred_element_type=jnp.float32,
                                    precision=precision)

    # Bias kept out of the matmul so the constant term stays f32 on the bf16 path.
    y = y + c_ref[...]                                                # (Kp, tile_n)

    # Numerically-stable logsumexp over components (sublane axis); samples stay on
    # lanes, so the store is a dense (1, tile_n) slab (no masked partial stores).
    m = jnp.max(y, axis=0, keepdims=True)                             # (1, tile_n)
    s = jnp.sum(jnp.exp(y - m), axis=0, keepdims=True)                # (1, tile_n)
    out_ref[...] = m + jnp.log(s)


# ----------------------------------------------------------------------------
# Target-aware tiling
# ----------------------------------------------------------------------------
def _tpu_target_info():
    """Best-effort TPU probe: (dual TensorCore?, VMEM budget bytes, bf16 VPU?)."""
    kind = ""
    try:
        kind = jax.devices()[0].device_kind.lower()
    except Exception:
        pass
    two_tc = any(t in kind for t in ("v4", "v5p", "v7", "7x"))   # megacore / dual-TC chips
    is_v5e = ("v5e" in kind) or ("v5 lite" in kind) or ("v5lite" in kind)
    # Stay well inside the default scoped-VMEM limit (~16 MiB v5e, ~32 MiB v6e/v7x).
    vmem_budget = (8 << 20) if (is_v5e or not kind) else (12 << 20)
    bf16_vpu = not is_v5e
    return two_tc, vmem_budget, bf16_vpu


def _choose_tile_n(n, d, k_pad, two_tc, vmem_budget_bytes):
    """Largest 128-multiple sample tile that fits the VMEM budget.

    Budget model (bytes/sample): double-buffered x block (lane-padded when D < 128)
    + ~3 elementwise temporaries (cast / square / concat) + the (Kp, tile_n) f32
    logits / exp temporaries.  Single-TC chips (v5e/v6e) take one big tile (extra
    grid steps are pure ~0.35us overhead); dual-TC chips (v7x) aim for the smallest
    even step count so both TensorCores get equal work.
    """
    d_pad = 128 * pl.cdiv(max(d, 1), 128)
    per_sample = (2 + 3) * d_pad * 4 + 2 * k_pad * 4
    t_budget = max(128, (vmem_budget_bytes // per_sample) // 128 * 128)
    t_budget = min(t_budget, 8192)
    n_ceil = 128 * pl.cdiv(max(n, 1), 128)
    if two_tc and n_ceil >= 256:
        steps = 2
        tile = 128 * pl.cdiv(pl.cdiv(n_ceil, steps), 128)
        while tile > t_budget:
            steps += 2
            tile = 128 * pl.cdiv(pl.cdiv(n_ceil, steps), 128)
        return tile
    return min(t_budget, n_ceil)


# ----------------------------------------------------------------------------
# Wrapper around pallas_call (with a compile-time variant fallback cascade)
# ----------------------------------------------------------------------------
_KERNEL_VARIANT_CACHE = {}   # compute dtype name -> (fused, precision) that lowered cleanly


def gmm_log_mixture_density(x, a1, a2, c, *, compute_dtype=jnp.float32, tile_n=None):
    """Returns logsumexp_k [ a1_k . x^2 + a2_k . x + c_k ], shape (N,), float32."""
    n, d = x.shape
    k_pad = a1.shape[0]
    compute_dtype = np.dtype(compute_dtype)
    two_tc, vmem_budget, bf16_vpu = _tpu_target_info()
    if tile_n is None:
        tile_n = _choose_tile_n(n, d, k_pad, two_tc, vmem_budget)
    grid = (pl.cdiv(n, tile_n),)   # last block may be ragged: OOB reads only pollute
                                   # their own (masked) output lanes, OOB writes dropped
    square_in_f32 = (compute_dtype == jnp.float32) or (not bf16_vpu)

    # Single-buffer the resident params only when the dead second buffer matters.
    param_mode = (pl.Buffered(1)
                  if k_pad * d * compute_dtype.itemsize > (1 << 20) else None)

    def _resident_spec(shape):
        if param_mode is None:
            return pl.BlockSpec(shape, lambda i: (0, 0))
        return pl.BlockSpec(shape, lambda i: (0, 0), pipeline_mode=param_mode)

    def run(fused, precision):
        kernel = functools.partial(
            _gmm_logdensity_kernel, compute_dtype=compute_dtype,
            square_in_f32=square_in_f32, fused=fused, precision=precision)
        out = pl.pallas_call(
            kernel,
            out_shape=jax.ShapeDtypeStruct((1, n), jnp.float32),
            grid_spec=pltpu.PrefetchScalarGridSpec(
                num_scalar_prefetch=0,
                grid=grid,
                in_specs=[
                    pl.BlockSpec((tile_n, d), lambda i: (i, 0)),   # x, natural layout
                    _resident_spec((k_pad, d)),                    # -w            (resident)
                    _resident_spec((k_pad, d)),                    # 2*mean*w      (resident)
                    _resident_spec((k_pad, 1)),                    # per-comp const
                ],
                out_specs=pl.BlockSpec((1, tile_n), lambda i: (0, i)),
            ),
            compiler_params=pltpu.CompilerParams(
                dimension_semantics=("parallel",)),
        )(x, a1, a2, c)
        return out[0]

    key = compute_dtype.name
    if key in _KERNEL_VARIANT_CACHE:
        configs = [_KERNEL_VARIANT_CACHE[key]]
    else:
        hp = jax.lax.Precision.HIGHEST if compute_dtype == jnp.float32 else None
        configs = list(dict.fromkeys([(True, hp), (True, None), (False, hp), (False, None)]))
    last_err = None
    for fused, precision in configs:
        try:   # fallback only resolves for eager calls; jitted users can pass tile_n etc.
            out = run(fused, precision)
            _KERNEL_VARIANT_CACHE[key] = (fused, precision)
            return out
        except Exception as err:   # Mosaic feature unavailable -> try a simpler variant
            last_err = err
    raise last_err


# ----------------------------------------------------------------------------
# GaussianMixture module (parameters + glue); forward = Pallas kernel + prior
# ----------------------------------------------------------------------------
class GaussianMixtureJAX:
    """JAX/Pallas port of multiDGD's GaussianMixture (diagonal covariance)."""

    def __init__(self, n_mix_comp, dim, covariance_type="diagonal",
                 mean_init=(2.0, 5.0), sd_init=(0.5, 1.0), weight_alpha=1,
                 key=jax.random.PRNGKey(0)):
        assert covariance_type == "diagonal"   # matches the default PyTorch path used here
        self.dim = dim
        self.n_mix_comp = n_mix_comp
        self._pi_term = -0.5 * dim * math.log(2.0 * math.pi)
        self._neglogvar_factor = 0.5           # diagonal covariance

        # --- softball prior on means + deterministic (seeded) approximate sampling ---
        radius, sharpness = mean_init
        self._mean_radius = float(radius)
        self._mean_sharpness = float(sharpness)
        self._softball_norm = (math.lgamma(1 + dim * 0.5)
                               - dim * (math.log(radius) + 0.5 * math.log(math.pi)))
        k1, k2 = jax.random.split(key)
        g = jax.random.normal(k1, (n_mix_comp, dim), dtype=jnp.float32)
        g = g / jnp.linalg.norm(g, axis=-1, keepdims=True)
        r = radius * jnp.power(jax.random.uniform(k2, (n_mix_comp, 1),
                                                  dtype=jnp.float32), 1.0 / dim)
        self.mean = g * r                                            # (K, D)

        # --- neglogvar parameter and its Gaussian prior -------------------------------
        self._sd_init = sd_init
        nlv0 = -2.0 * math.log(sd_init[0])
        self.neglogvar = jnp.full((n_mix_comp, dim), nlv0, dtype=jnp.float32)
        self._nlv_prior_mean = nlv0
        self._nlv_prior_sd = float(sd_init[1])

        # --- mixture weights / Dirichlet prior ----------------------------------------
        self._weight_alpha = weight_alpha
        self._dirichlet_constant = (math.lgamma(n_mix_comp * weight_alpha)
                                    - n_mix_comp * math.lgamma(weight_alpha))
        self.weight = jnp.ones((n_mix_comp,), dtype=jnp.float32)

    # TODO(synk): sampling helpers (sample / component_sample / sample_new_points /
    # clustering) are torch.distributions conveniences outside the forward pass and
    # are not ported here.

    # ---- prior log prob (parameter-only scalar, plain JAX glue) ----------------------
    def _prior_log_prob(self):
        p = self._dirichlet_constant
        if self._weight_alpha != 1:
            probs = jax.nn.softmax(self.weight, axis=-1)
            p = p + (self._weight_alpha - 1.0) * jnp.sum(jnp.log(probs))
        mean_norm = jnp.linalg.norm(self.mean, axis=-1)              # (K,)
        sb = self._softball_norm - jnp.log(
            1.0 + jnp.exp(self._mean_sharpness *
                          (mean_norm / self._mean_radius - 1.0)))
        p = p + jnp.sum(sb)
        sd = self._nlv_prior_sd
        z = (self.neglogvar - self._nlv_prior_mean) / sd
        nlv_lp = -0.5 * z * z - math.log(sd) - 0.5 * math.log(2.0 * math.pi)
        p = p + jnp.sum(nlv_lp)
        return p

    # ---- forward: negative log density of x under the mixture + prior ----------------
    def forward(self, x, *, compute_dtype=jnp.float32):
        K = self.n_mix_comp
        assert K >= 1   # the -inf padding below relies on >= 1 real component per tile
        w = 0.5 * jnp.exp(self.neglogvar)                            # 1/(2*cov), (K, D)
        # per-component constant (mu^2 term of the expanded square folded in)
        c = (self._neglogvar_factor * jnp.sum(self.neglogvar, axis=-1)
             + self._pi_term
             + jax.nn.log_softmax(self.weight, axis=0)
             - jnp.sum(self.mean * self.mean * w, axis=-1))          # (K,)
        a1 = (-w).astype(compute_dtype)                              # (K, D)
        a2 = (2.0 * self.mean * w).astype(compute_dtype)             # (K, D)

        # Pad K to sublane granularity; padded components get zero weight rows and a
        # -inf constant, so they contribute exp(-inf) = 0 to the logsumexp (exact).
        k_pad = 8 * ((K + 7) // 8)
        if k_pad != K:
            a1 = jnp.pad(a1, ((0, k_pad - K), (0, 0)))
            a2 = jnp.pad(a2, ((0, k_pad - K), (0, 0)))
            c = jnp.pad(c, (0, k_pad - K), constant_values=-jnp.inf)
        c = c.reshape(k_pad, 1).astype(jnp.float32)

        # x goes to the kernel untouched (no wrapper-side transpose/cast/pad pass).
        y = gmm_log_mixture_density(x, a1, a2, c, compute_dtype=compute_dtype)   # (N,)
        return -(y + self._prior_log_prob())

    # pure-JAX reference of the same math (sanity check)
    def forward_ref(self, x):
        cov = jnp.exp(-self.neglogvar)
        y = -jnp.sum((x[:, None, :] - self.mean) ** 2 / (2.0 * cov), axis=-1)
        y = y + self._neglogvar_factor * jnp.sum(self.neglogvar, axis=-1)
        y = y + self._pi_term
        y = y + jax.nn.log_softmax(self.weight, axis=0)
        y = jax.nn.logsumexp(y, axis=-1)
        return -(y + self._prior_log_prob())


if __name__ == "__main__":
    key = jax.random.PRNGKey(0)
    k_param, k_x = jax.random.split(key)

    N, K, D = 128, 8, 32
    gmm = GaussianMixtureJAX(n_mix_comp=K, dim=D, covariance_type="diagonal",
                             mean_init=(2.0, 5.0), sd_init=(0.5, 1.0),
                             weight_alpha=1, key=k_param)
    x = jax.random.normal(k_x, (N, D), dtype=jnp.float32)
    ref = gmm.forward_ref(x)

    # exact path: f32 MXU operands, HIGHEST contraction precision
    out = jax.block_until_ready(gmm.forward(x))
    assert out.shape == (N,)
    assert jnp.allclose(out, ref, rtol=1e-4, atol=1e-3), (out[:4], ref[:4])

    # fast path: bf16 MXU operands, f32 accumulation + f32 epilogue
    out_bf16 = jax.block_until_ready(gmm.forward(x, compute_dtype=jnp.bfloat16))
    assert jnp.allclose(out_bf16, ref, rtol=3e-2, atol=2.0), (out_bf16[:4], ref[:4])

    # ragged N (not a multiple of the 128-wide lane tile): exercises the masked last block
    x2 = jax.random.normal(jax.random.fold_in(k_x, 1), (200, D), dtype=jnp.float32)
    ref2 = gmm.forward_ref(x2)
    out2 = jax.block_until_ready(gmm.forward(x2))
    assert out2.shape == (200,)
    assert jnp.allclose(out2, ref2, rtol=1e-4, atol=1e-3), (out2[:4], ref2[:4])

    print("KERNEL_OK")
</pallas_src>

<mosaic_0001>
module attributes {stable_mosaic.version = 11 : i64} {
  func.func @_gmm_logdensity_kernel(%arg0: i32, %arg1: memref<128x32xf32, #tpu.memory_space<vmem>>, %arg2: memref<8x32xf32, #tpu.memory_space<vmem>>, %arg3: memref<8x32xf32, #tpu.memory_space<vmem>>, %arg4: memref<8x1xf32, #tpu.memory_space<vmem>>, %arg5: memref<1x128xf32, #tpu.memory_space<vmem>>) attributes {dimension_semantics = [#tpu.dimension_semantics<parallel>], iteration_bounds = array<i64: 1>, scalar_prefetch = 0 : i64, scratch_operands = 0 : i64, tpu.core_type = #tpu.core_type<tc>, window_params = [{transform_indices = @transform_0, window_bounds = array<i64: 128, 32>}, {pipeline_mode = #tpu.pipeline_mode<synchronous>, transform_indices = @transform_1, window_bounds = array<i64: 8, 32>}, {pipeline_mode = #tpu.pipeline_mode<synchronous>, transform_indices = @transform_2, window_bounds = array<i64: 8, 32>}, {pipeline_mode = #tpu.pipeline_mode<synchronous>, transform_indices = @transform_3, window_bounds = array<i64: 8, 1>}, {transform_indices = @transform_4, window_bounds = array<i64: 1, 128>}]} {
    %c0 = arith.constant 0 : index
    %c0_0 = arith.constant 0 : index
    %0 = vector.load %arg1[%c0, %c0_0] : memref<128x32xf32, #tpu.memory_space<vmem>>, vector<128x32xf32>
    %1 = arith.mulf %0, %0 : vector<128x32xf32>
    %c0_1 = arith.constant 0 : index
    %c0_2 = arith.constant 0 : index
    %2 = vector.load %arg2[%c0_1, %c0_2] : memref<8x32xf32, #tpu.memory_space<vmem>>, vector<8x32xf32>
    %c0_3 = arith.constant 0 : index
    %c0_4 = arith.constant 0 : index
    %3 = vector.load %arg3[%c0_3, %c0_4] : memref<8x32xf32, #tpu.memory_space<vmem>>, vector<8x32xf32>
    %4 = tpu.concatenate %2, %3 in 1 : vector<8x32xf32>, vector<8x32xf32> -> vector<8x64xf32>
    %5 = tpu.concatenate %1, %0 in 1 : vector<128x32xf32>, vector<128x32xf32> -> vector<128x64xf32>
    %cst = arith.constant dense<0.000000e+00> : vector<8x128xf32>
    %6 = tpu.matmul %4, %5, %cst {dimension_numbers = #tpu.dot_dimension_numbers<[1], [1], [0], [0], [0, 0, 1, 0], [], []>, precision = #tpu.contract_precision<fp32>} : vector<8x64xf32>, vector<128x64xf32>, vector<8x128xf32> -> vector<8x128xf32>
    %c0_5 = arith.constant 0 : index
    %c0_6 = arith.constant 0 : index
    %7 = vector.load %arg4[%c0_5, %c0_6] : memref<8x1xf32, #tpu.memory_space<vmem>>, vector<8x1xf32>
    %8 = vector.broadcast %7 : vector<8x1xf32> to vector<8x128xf32>
    %9 = arith.addf %6, %8 : vector<8x128xf32>
    %cst_7 = arith.constant dense<0xFF800000> : vector<128xf32>
    %10 = vector.multi_reduction <maximumf>, %9, %cst_7 [0] : vector<8x128xf32> to vector<128xf32>
    %11 = vector.shape_cast %10 : vector<128xf32> to vector<1x128xf32>
    %12 = vector.broadcast %11 : vector<1x128xf32> to vector<8x128xf32>
    %13 = arith.subf %9, %12 : vector<8x128xf32>
    %14 = math.exp %13 : vector<8x128xf32>
    %cst_8 = arith.constant dense<0.000000e+00> : vector<128xf32>
    %15 = vector.multi_reduction <add>, %14, %cst_8 [0] : vector<8x128xf32> to vector<128xf32>
    %16 = vector.shape_cast %15 : vector<128xf32> to vector<1x128xf32>
    %17 = math.log %16 : vector<1x128xf32>
    %18 = arith.addf %11, %17 : vector<1x128xf32>
    %c0_9 = arith.constant 0 : index
    %c0_10 = arith.constant 0 : index
    %19 = vector.load %arg5[%c0_9, %c0_10] : memref<1x128xf32, #tpu.memory_space<vmem>>, vector<1x128xf32>
    tpu.vector_store %arg5[%c0_9, %c0_10], %18 {strides = array<i32>} : memref<1x128xf32, #tpu.memory_space<vmem>>, vector<1x128xf32>,
    return
  }
  func.func @transform_0(%arg0: i32) -> (i32, i32) {
    %c0_i32 = arith.constant 0 : i32
    %c0_i32_0 = arith.constant 0 : i32
    return %arg0, %c0_i32 : i32, i32
  }
  func.func @transform_1(%arg0: i32) -> (i32, i32) {
    %c0_i32 = arith.constant 0 : i32
    %c0_i32_0 = arith.constant 0 : i32
    %c0_i32_1 = arith.constant 0 : i32
    return %c0_i32, %c0_i32_0 : i32, i32
  }
  func.func @transform_2(%arg0: i32) -> (i32, i32) {
    %c0_i32 = arith.constant 0 : i32
    %c0_i32_0 = arith.constant 0 : i32
    %c0_i32_1 = arith.constant 0 : i32
    return %c0_i32, %c0_i32_0 : i32, i32
  }
  func.func @transform_3(%arg0: i32) -> (i32, i32) {
    %c0_i32 = arith.constant 0 : i32
    %c0_i32_0 = arith.constant 0 : i32
    %c0_i32_1 = arith.constant 0 : i32
    return %c0_i32, %c0_i32_0 : i32, i32
  }
  func.func @transform_4(%arg0: i32) -> (i32, i32) {
    %c0_i32 = arith.constant 0 : i32
    %c0_i32_0 = arith.constant 0 : i32
    return %c0_i32, %arg0 : i32, i32
  }
}

module attributes {stable_mosaic.version = 11 : i64} {
  func.func @_gmm_logdensity_kernel(%arg0: i32, %arg1: memref<128x32xf32, #tpu.memory_space<vmem>>, %arg2: memref<8x32xf32, #tpu.memory_space<vmem>>, %arg3: memref<8x32xf32, #tpu.memory_space<vmem>>, %arg4: memref<8x1xf32, #tpu.memory_space<vmem>>, %arg5: memref<1x128xf32, #tpu.memory_space<vmem>>) attributes {dimension_semantics = [#tpu.dimension_semantics<parallel>], iteration_bounds = array<i64: 1>, scalar_prefetch = 0 : i64, scratch_operands = 0 : i64, tpu.core_type = #tpu.core_type<tc>, window_params = [{transform_indices = @transform_0, window_bounds = array<i64: 128, 32>}, {pipeline_mode = #tpu.pipeline_mode<synchronous>, transform_indices = @transform_1, window_bounds = array<i64: 8, 32>}, {pipeline_mode = #tpu.pipeline_mode<synchronous>, transform_indices = @transform_2, window_bounds = array<i64: 8, 32>}, {pipeline_mode = #tpu.pipeline_mode<synchronous>, transform_indices = @transform_3, window_bounds = array<i64: 8, 1>}, {transform_indices = @transform_4, window_bounds = array<i64: 1, 128>}]} {
    %c0 = arith.constant 0 : index
    %c0_0 = arith.constant 0 : index
    %0 = vector.load %arg1[%c0, %c0_0] : memref<128x32xf32, #tpu.memory_space<vmem>>, vector<128x32xf32>
    %1 = arith.mulf %0, %0 : vector<128x32xf32>
    %c0_1 = arith.constant 0 : index
    %c0_2 = arith.constant 0 : index
    %2 = vector.load %arg2[%c0_1, %c0_2] : memref<8x32xf32, #tpu.memory_space<vmem>>, vector<8x32xf32>
    %c0_3 = arith.constant 0 : index
    %c0_4 = arith.constant 0 : index
    %3 = vector.load %arg3[%c0_3, %c0_4] : memref<8x32xf32, #tpu.memory_space<vmem>>, vector<8x32xf32>
    %4 = tpu.concatenate %2, %3 in 1 : vector<8x32xf32>, vector<8x32xf32> -> vector<8x64xf32>
    %5 = tpu.concatenate %1, %0 in 1 : vector<128x32xf32>, vector<128x32xf32> -> vector<128x64xf32>
    %cst = arith.constant dense<0.000000e+00> : vector<8x128xf32>
    %6 = tpu.matmul %4, %5, %cst {dimension_numbers = #tpu.dot_dimension_numbers<[1], [1], [0], [0], [0, 0, 1, 0], [], []>} : vector<8x64xf32>, vector<128x64xf32>, vector<8x128xf32> -> vector<8x128xf32>
    %c0_5 = arith.constant 0 : index
    %c0_6 = arith.constant 0 : index
    %7 = vector.load %arg4[%c0_5, %c0_6] : memref<8x1xf32, #tpu.memory_space<vmem>>, vector<8x1xf32>
    %8 = vector.broadcast %7 : vector<8x1xf32> to vector<8x128xf32>
    %9 = arith.addf %6, %8 : vector<8x128xf32>
    %cst_7 = arith.constant dense<0xFF800000> : vector<128xf32>
    %10 = vector.multi_reduction <maximumf>, %9, %cst_7 [0] : vector<8x128xf32> to vector<128xf32>
    %11 = vector.shape_cast %10 : vector<128xf32> to vector<1x128xf32>
    %12 = vector.broadcast %11 : vector<1x128xf32> to vector<8x128xf32>
    %13 = arith.subf %9, %12 : vector<8x128xf32>
    %14 = math.exp %13 : vector<8x128xf32>
    %cst_8 = arith.constant dense<0.000000e+00> : vector<128xf32>
    %15 = vector.multi_reduction <add>, %14, %cst_8 [0] : vector<8x128xf32> to vector<128xf32>
    %16 = vector.shape_cast %15 : vector<128xf32> to vector<1x128xf32>
    %17 = math.log %16 : vector<1x128xf32>
    %18 = arith.addf %11, %17 : vector<1x128xf32>
    %c0_9 = arith.constant 0 : index
    %c0_10 = arith.constant 0 : index
    %19 = vector.load %arg5[%c0_9, %c0_10] : memref<1x128xf32, #tpu.memory_space<vmem>>, vector<1x128xf32>
    tpu.vector_store %arg5[%c0_9, %c0_10], %18 {strides = array<i32>} : memref<1x128xf32, #tpu.memory_space<vmem>>, vector<1x128xf32>,
    return
  }
  func.func @transform_0(%arg0: i32) -> (i32, i32) {
    %c0_i32 = arith.constant 0 : i32
    %c0_i32_0 = arith.constant 0 : i32
    return %arg0, %c0_i32 : i32, i32
  }
  func.func @transform_1(%arg0: i32) -> (i32, i32) {
    %c0_i32 = arith.constant 0 : i32
    %c0_i32_0 = arith.constant 0 : i32
    %c0_i32_1 = arith.constant 0 : i32
    return %c0_i32, %c0_i32_0 : i32, i32
  }
  func.func @transform_2(%arg0: i32) -> (i32, i32) {
    %c0_i32 = arith.constant 0 : i32
    %c0_i32_0 = arith.constant 0 : i32
    %c0_i32_1 = arith.constant 0 : i32
    return %c0_i32, %c0_i32_0 : i32, i32
  }
  func.func @transform_3(%arg0: i32) -> (i32, i32) {
    %c0_i32 = arith.constant 0 : i32
    %c0_i32_0 = arith.constant 0 : i32
    %c0_i32_1 = arith.constant 0 : i32
    return %c0_i32, %c0_i32_0 : i32, i32
  }
  func.func @transform_4(%arg0: i32) -> (i32, i32) {
    %c0_i32 = arith.constant 0 : i32
    %c0_i32_0 = arith.constant 0 : i32
    return %c0_i32, %arg0 : i32, i32
  }
}

module attributes {stable_mosaic.version = 11 : i64} {
  func.func @_gmm_logdensity_kernel(%arg0: i32, %arg1: memref<128x32xf32, #tpu.memory_space<vmem>>, %arg2: memref<8x32xf32, #tpu.memory_space<vmem>>, %arg3: memref<8x32xf32, #tpu.memory_space<vmem>>, %arg4: memref<8x1xf32, #tpu.memory_space<vmem>>, %arg5: memref<1x128xf32, #tpu.memory_space<vmem>>) attributes {dimension_semantics = [#tpu.dimension_semantics<parallel>], iteration_bounds = array<i64: 1>, scalar_prefetch = 0 : i64, scratch_operands = 0 : i64, tpu.core_type = #tpu.core_type<tc>, window_params = [{transform_indices = @transform_0, window_bounds = array<i64: 128, 32>}, {pipeline_mode = #tpu.pipeline_mode<synchronous>, transform_indices = @transform_1, window_bounds = array<i64: 8, 32>}, {pipeline_mode = #tpu.pipeline_mode<synchronous>, transform_indices = @transform_2, window_bounds = array<i64: 8, 32>}, {pipeline_mode = #tpu.pipeline_mode<synchronous>, transform_indices = @transform_3, window_bounds = array<i64: 8, 1>}, {transform_indices = @transform_4, window_bounds = array<i64: 1, 128>}]} {
    %c0 = arith.constant 0 : index
    %c0_0 = arith.constant 0 : index
    %0 = vector.load %arg1[%c0, %c0_0] : memref<128x32xf32, #tpu.memory_space<vmem>>, vector<128x32xf32>
    %1 = arith.mulf %0, %0 : vector<128x32xf32>
    %c0_1 = arith.constant 0 : index
    %c0_2 = arith.constant 0 : index
    %2 = vector.load %arg2[%c0_1, %c0_2] : memref<8x32xf32, #tpu.memory_space<vmem>>, vector<8x32xf32>
    %cst = arith.constant dense<0.000000e+00> : vector<8x128xf32>
    %3 = tpu.matmul %2, %1, %cst {dimension_numbers = #tpu.dot_dimension_numbers<[1], [1], [0], [0], [0, 0, 1, 0], [], []>, precision = #tpu.contract_precision<fp32>} : vector<8x32xf32>, vector<128x32xf32>, vector<8x128xf32> -> vector<8x128xf32>
    %c0_3 = arith.constant 0 : index
    %c0_4 = arith.constant 0 : index
    %4 = vector.load %arg3[%c0_3, %c0_4] : memref<8x32xf32, #tpu.memory_space<vmem>>, vector<8x32xf32>
    %cst_5 = arith.constant dense<0.000000e+00> : vector<8x128xf32>
    %5 = tpu.matmul %4, %0, %cst_5 {dimension_numbers = #tpu.dot_dimension_numbers<[1], [1], [0], [0], [0, 0, 1, 0], [], []>, precision = #tpu.contract_precision<fp32>} : vector<8x32xf32>, vector<128x32xf32>, vector<8x128xf32> -> vector<8x128xf32>
    %6 = arith.addf %3, %5 : vector<8x128xf32>
    %c0_6 = arith.constant 0 : index
    %c0_7 = arith.constant 0 : index
    %7 = vector.load %arg4[%c0_6, %c0_7] : memref<8x1xf32, #tpu.memory_space<vmem>>, vector<8x1xf32>
    %8 = vector.broadcast %7 : vector<8x1xf32> to vector<8x128xf32>
    %9 = arith.addf %6, %8 : vector<8x128xf32>
    %cst_8 = arith.constant dense<0xFF800000> : vector<128xf32>
    %10 = vector.multi_reduction <maximumf>, %9, %cst_8 [0] : vector<8x128xf32> to vector<128xf32>
    %11 = vector.shape_cast %10 : vector<128xf32> to vector<1x128xf32>
    %12 = vector.broadcast %11 : vector<1x128xf32> to vector<8x128xf32>
    %13 = arith.subf %9, %12 : vector<8x128xf32>
    %14 = math.exp %13 : vector<8x128xf32>
    %cst_9 = arith.constant dense<0.000000e+00> : vector<128xf32>
    %15 = vector.multi_reduction <add>, %14, %cst_9 [0] : vector<8x128xf32> to vector<128xf32>
    %16 = vector.shape_cast %15 : vector<128xf32> to vector<1x128xf32>
    %17 = math.log %16 : vector<1x128xf32>
    %18 = arith.addf %11, %17 : vector<1x128xf32>
    %c0_10 = arith.constant 0 : index
    %c0_11 = arith.constant 0 : index
    %19 = vector.load %arg5[%c0_10, %c0_11] : memref<1x128xf32, #tpu.memory_space<vmem>>, vector<1x128xf32>
    tpu.vector_store %arg5[%c0_10, %c0_11], %18 {strides = array<i32>} : memref<1x128xf32, #tpu.memory_space<vmem>>, vector<1x128xf32>,
    return
  }
  func.func @transform_0(%arg0: i32) -> (i32, i32) {
    %c0_i32 = arith.constant 0 : i32
    %c0_i32_0 = arith.constant 0 : i32
    return %arg0, %c0_i32 : i32, i32
  }
  func.func @transform_1(%arg0: i32) -> (i32, i32) {
    %c0_i32 = arith.constant 0 : i32
    %c0_i32_0 = arith.constant 0 : i32
    %c0_i32_1 = arith.constant 0 : i32
    return %c0_i32, %c0_i32_0 : i32, i32
  }
  func.func @transform_2(%arg0: i32) -> (i32, i32) {
    %c0_i32 = arith.constant 0 : i32
    %c0_i32_0 = arith.constant 0 : i32
    %c0_i32_1 = arith.constant 0 : i32
    return %c0_i32, %c0_i32_0 : i32, i32
  }
  func.func @transform_3(%arg0: i32) -> (i32, i32) {
    %c0_i32 = arith.constant 0 : i32
    %c0_i32_0 = arith.constant 0 : i32
    %c0_i32_1 = arith.constant 0 : i32
    return %c0_i32, %c0_i32_0 : i32, i32
  }
  func.func @transform_4(%arg0: i32) -> (i32, i32) {
    %c0_i32 = arith.constant 0 : i32
    %c0_i32_0 = arith.constant 0 : i32
    return %c0_i32, %arg0 : i32, i32
  }
}

module attributes {stable_mosaic.version = 11 : i64} {
  func.func @_gmm_logdensity_kernel(%arg0: i32, %arg1: memref<128x32xf32, #tpu.memory_space<vmem>>, %arg2: memref<8x32xf32, #tpu.memory_space<vmem>>, %arg3: memref<8x32xf32, #tpu.memory_space<vmem>>, %arg4: memref<8x1xf32, #tpu.memory_space<vmem>>, %arg5: memref<1x128xf32, #tpu.memory_space<vmem>>) attributes {dimension_semantics = [#tpu.dimension_semantics<parallel>], iteration_bounds = array<i64: 1>, scalar_prefetch = 0 : i64, scratch_operands = 0 : i64, tpu.core_type = #tpu.core_type<tc>, window_params = [{transform_indices = @transform_0, window_bounds = array<i64: 128, 32>}, {pipeline_mode = #tpu.pipeline_mode<synchronous>, transform_indices = @transform_1, window_bounds = array<i64: 8, 32>}, {pipeline_mode = #tpu.pipeline_mode<synchronous>, transform_indices = @transform_2, window_bounds = array<i64: 8, 32>}, {pipeline_mode = #tpu.pipeline_mode<synchronous>, transform_indices = @transform_3, window_bounds = array<i64: 8, 1>}, {transform_indices = @transform_4, window_bounds = array<i64: 1, 128>}]} {
    %c0 = arith.constant 0 : index
    %c0_0 = arith.constant 0 : index
    %0 = vector.load %arg1[%c0, %c0_0] : memref<128x32xf32, #tpu.memory_space<vmem>>, vector<128x32xf32>
    %1 = arith.mulf %0, %0 : vector<128x32xf32>
    %c0_1 = arith.constant 0 : index
    %c0_2 = arith.constant 0 : index
    %2 = vector.load %arg2[%c0_1, %c0_2] : memref<8x32xf32, #tpu.memory_space<vmem>>, vector<8x32xf32>
    %cst = arith.constant dense<0.000000e+00> : vector<8x128xf32>
    %3 = tpu.matmul %2, %1, %cst {dimension_numbers = #tpu.dot_dimension_numbers<[1], [1], [0], [0], [0, 0, 1, 0], [], []>} : vector<8x32xf32>, vector<128x32xf32>, vector<8x128xf32> -> vector<8x128xf32>
    %c0_3 = arith.constant 0 : index
    %c0_4 = arith.constant 0 : index
    %4 = vector.load %arg3[%c0_3, %c0_4] : memref<8x32xf32, #tpu.memory_space<vmem>>, vector<8x32xf32>
    %cst_5 = arith.constant dense<0.000000e+00> : vector<8x128xf32>
    %5 = tpu.matmul %4, %0, %cst_5 {dimension_numbers = #tpu.dot_dimension_numbers<[1], [1], [0], [0], [0, 0, 1, 0], [], []>} : vector<8x32xf32>, vector<128x32xf32>, vector<8x128xf32> -> vector<8x128xf32>
    %6 = arith.addf %3, %5 : vector<8x128xf32>
    %c0_6 = arith.constant 0 : index
    %c0_7 = arith.constant 0 : index
    %7 = vector.load %arg4[%c0_6, %c0_7] : memref<8x1xf32, #tpu.memory_space<vmem>>, vector<8x1xf32>
    %8 = vector.broadcast %7 : vector<8x1xf32> to vector<8x128xf32>
    %9 = arith.addf %6, %8 : vector<8x128xf32>
    %cst_8 = arith.constant dense<0xFF800000> : vector<128xf32>
    %10 = vector.multi_reduction <maximumf>, %9, %cst_8 [0] : vector<8x128xf32> to vector<128xf32>
    %11 = vector.shape_cast %10 : vector<128xf32> to vector<1x128xf32>
    %12 = vector.broadcast %11 : vector<1x128xf32> to vector<8x128xf32>
    %13 = arith.subf %9, %12 : vector<8x128xf32>
    %14 = math.exp %13 : vector<8x128xf32>
    %cst_9 = arith.constant dense<0.000000e+00> : vector<128xf32>
    %15 = vector.multi_reduction <add>, %14, %cst_9 [0] : vector<8x128xf32> to vector<128xf32>
    %16 = vector.shape_cast %15 : vector<128xf32> to vector<1x128xf32>
    %17 = math.log %16 : vector<1x128xf32>
    %18 = arith.addf %11, %17 : vector<1x128xf32>
    %c0_10 = arith.constant 0 : index
    %c0_11 = arith.constant 0 : index
    %19 = vector.load %arg5[%c0_10, %c0_11] : memref<1x128xf32, #tpu.memory_space<vmem>>, vector<1x128xf32>
    tpu.vector_store %arg5[%c0_10, %c0_11], %18 {strides = array<i32>} : memref<1x128xf32, #tpu.memory_space<vmem>>, vector<1x128xf32>,
    return
  }
  func.func @transform_0(%arg0: i32) -> (i32, i32) {
    %c0_i32 = arith.constant 0 : i32
    %c0_i32_0 = arith.constant 0 : i32
    return %arg0, %c0_i32 : i32, i32
  }
  func.func @transform_1(%arg0: i32) -> (i32, i32) {
    %c0_i32 = arith.constant 0 : i32
    %c0_i32_0 = arith.constant 0 : i32
    %c0_i32_1 = arith.constant 0 : i32
    return %c0_i32, %c0_i32_0 : i32, i32
  }
  func.func @transform_2(%arg0: i32) -> (i32, i32) {
    %c0_i32 = arith.constant 0 : i32
    %c0_i32_0 = arith.constant 0 : i32
    %c0_i32_1 = arith.constant 0 : i32
    return %c0_i32, %c0_i32_0 : i32, i32
  }
  func.func @transform_3(%arg0: i32) -> (i32, i32) {
    %c0_i32 = arith.constant 0 : i32
    %c0_i32_0 = arith.constant 0 : i32
    %c0_i32_1 = arith.constant 0 : i32
    return %c0_i32, %c0_i32_0 : i32, i32
  }
  func.func @transform_4(%arg0: i32) -> (i32, i32) {
    %c0_i32 = arith.constant 0 : i32
    %c0_i32_0 = arith.constant 0 : i32
    return %c0_i32, %arg0 : i32, i32
  }
}

</mosaic_0001>

<bundles_post_ra>
// kernel: tpu_custom_call.1
= control target key start
LH: loop header
LB: loop body
LE: loop exit
PB: predicated region body
PF: predicated region fallthrough
CT: control target
= control target key end

     0   :  { %s1372_s19 = smov 32   ;;  %v1373_v4 = vmov 0.0|0.0   ;;  %s1816_s0 = inlined_call_operand.vmem [shape: f32[128,32], index: 0, kind: input, shape index: {}]   ;;  %s1817_s1 = inlined_call_operand.vmem [shape: f32[8,32], index: 1, kind: input, shape index: {}]   ;;  %s1818_s2 = inlined_call_operand.vmem [shape: f32[8,32], index: 2, kind: input, shape index: {}]   ;;  %s1819_s3 = inlined_call_operand.vmem [shape: f32[8,1], index: 3, kind: input, shape index: {}]   ;;  %s1820_s4 = inlined_call_operand.hbm [shape: f32[1,128], index: 4, kind: output, shape index: {}]  }
   0x1   :  { %v20_v0 = vld [vmem:[%s1816_s0 + $0x10] sm:$0xff]  ;;  %v18_v1 = vld [vmem:[%s1816_s0] sm:$0xff]  ;;  %v21_v2 = vld [vmem:[%s1816_s0 + $0x18] sm:$0xff]  ;;  %1182 = vmatprep.subr.bf16.mxu1 %v1373_v4  ;;  %1254 = vmatprep.subr.bf16.mxu0 %v1373_v4 }
   0x2   :  { %78 = vrot.lane.b32.xlu1 %v20_v0, %s1372_s19  ;;  %74 = vrot.lane.b32.xlu0 %v18_v1, %s1372_s19  ;;  %v19_v3 = vld [vmem:[%s1816_s0 + $0x8] sm:$0xff]  ;;  %v22_v6 = vld [vmem:[%s1816_s0 + $0x20] sm:$0xff] }
   0x3   :  { %v23_v5 = vld [vmem:[%s1816_s0 + $0x28] sm:$0xff] }
   0x6   :  { %80 = vrot.lane.b32.xlu1 %v21_v2, %s1372_s19  ;;  %76 = vrot.lane.b32.xlu0 %v19_v3, %s1372_s19 }
   0x7   :  { %9 = vsyncpa [#allocation3], 0  ;;  %v25_v7 = vld [vmem:[%s1816_s0 + $0x38] sm:$0xff]  ;;  %v24_v8 = vld [vmem:[%s1816_s0 + $0x30] sm:$0xff]  ;;  %vm1374_vm0 = vmmov 0   ;;  %v1375_v18 = vmov 0.0   ;;  %v36_v19 = vmul.f32 %v20_v0, %v20_v0  ;;  %v34_v20 = vmul.f32 %v18_v1, %v18_v1 }
   0x8   :  { %v27_v9 = vld [vmem:[%s1816_s0 + $0x48] sm:$0xff]  ;;  %v26_v10 = vld [vmem:[%s1816_s0 + $0x40] sm:$0xff]  ;;  %v29_v11 = vld [vmem:[%s1816_s0 + $0x58] sm:$0xff]  ;;  %1004 = vmatprep.mubr.msk.f32.mxu1 %vm1374_vm0, %v1375_v18  ;;  %1109 = vmatprep.mubr.msk.f32.mxu0 %vm1374_vm0, %v1375_v18  ;;  %vm56_vm1 = vcmask 261120   ;;  %vm144_vm2 = vcmask 523264   ;;  %v37_v23 = vmul.f32 %v21_v2, %v21_v2  ;;  %v35_v24 = vmul.f32 %v19_v3, %v19_v3 }
   0x9   :  { %v28_v12 = vld [vmem:[%s1816_s0 + $0x50] sm:$0xff]  ;;  %v31_v13 = vld [vmem:[%s1816_s0 + $0x68] sm:$0xff]  ;;  %v30_v14 = vld [vmem:[%s1816_s0 + $0x60] sm:$0xff]  ;;  %v39_v31 = vmul.f32 %v23_v5, %v23_v5  ;;  %v38_v32 = vmul.f32 %v22_v6, %v22_v6  ;;  %v41_v33 = vmul.f32 %v25_v7, %v25_v7  ;;  %v40_v40 = vmul.f32 %v24_v8, %v24_v8 }
   0xa   :  { %84 = vrot.lane.b32.xlu1 %v23_v5, %s1372_s19  ;;  %82 = vrot.lane.b32.xlu0 %v22_v6, %s1372_s19  ;;  %v1464_v15 = vld [vmem:[%s1816_s0 + $0x78] sm:$0xff]  ;;  %v1469_v16 = vld [vmem:[%s1816_s0 + $0x70] sm:$0xff]  ;;  %v43_v41 = vmul.f32 %v27_v9, %v27_v9  ;;  %v42_v48 = vmul.f32 %v26_v10, %v26_v10  ;;  %v1497_v49 = vmul.f32 %v29_v11, %v29_v11 }
   0xb   :  { %v51_v17 = vld [vmem:[%s1818_s2] sm:$0xff]  ;;  %v1499_v50 = vmul.f32 %v28_v12, %v28_v12  ;;  %v1501_v51 = vmul.f32 %v31_v13, %v31_v13  ;;  %v1503_v54 = vmul.f32 %v30_v14, %v30_v14 }
   0xe   :  { %88 = vrot.lane.b32.xlu1 %v25_v7, %s1372_s19  ;;  %86 = vrot.lane.b32.xlu0 %v24_v8, %s1372_s19 }
  0x12   :  { %92 = vrot.lane.b32.xlu1 %v27_v9, %s1372_s19  ;;  %90 = vrot.lane.b32.xlu0 %v26_v10, %s1372_s19 }
  0x16   :  { %96 = vrot.lane.b32.xlu1 %v29_v11, %s1372_s19  ;;  %94 = vrot.lane.b32.xlu0 %v28_v12, %s1372_s19 }
  0x1a   :  { %100 = vrot.lane.b32.xlu1 %v31_v13, %s1372_s19  ;;  %98 = vrot.lane.b32.xlu0 %v30_v14, %s1372_s19 }
  0x1e   :  { %104 = vrot.lane.b32.xlu1 %v1464_v15, %s1372_s19  ;;  %102 = vrot.lane.b32.xlu0 %v1469_v16, %s1372_s19 }
  0x22   :  { %53 = vrot.lane.b32.xlu0 %v51_v17, %s1372_s19 }
  0x74   :  { %v79_v21 = vpop.permute.xlu1 %78  ;;  %v75_v22 = vpop.permute.xlu0 %74 }
  0x75   :  { %v124_v25 = vsel %vm56_vm1, %v36_v19, %v79_v21  ;;  %v122_v26 = vsel %vm56_vm1, %v34_v20, %v75_v22 }
  0x76   :  { %v155_v27 = vsel %vm144_vm2, %v124_v25, 0  ;;  %v149_v28 = vsel %vm144_vm2, %v122_v26, 0 }
  0x77   :  { %v203_v29 = vand.u32 4294901760, %v155_v27  ;;  %v197_v30 = vand.u32 4294901760, %v149_v28 }
  0x78   :  { %v81_v34 = vpop.permute.xlu1 %80  ;;  %v77_v35 = vpop.permute.xlu0 %76 }
  0x79   :  { %v1487_v36 = vsub.f32 %v155_v27, %v203_v29  ;;  %v1489_v37 = vsub.f32 %v149_v28, %v197_v30  ;;  %v125_v38 = vsel %vm56_vm1, %v37_v23, %v81_v34  ;;  %v123_v39 = vsel %vm56_vm1, %v35_v24, %v77_v35 }
  0x7a   :  { %v158_v42 = vsel %vm144_vm2, %v125_v38, 0  ;;  %v152_v43 = vsel %vm144_vm2, %v123_v39, 0 }
  0x7b   :  { %v304_v44 = vand.u32 4294901760, %v1487_v36  ;;  %v290_v45 = vand.u32 4294901760, %v1489_v37  ;;  %v206_v46 = vand.u32 4294901760, %v158_v42  ;;  %v200_v47 = vand.u32 4294901760, %v152_v43 }
  0x7c   :  { %v85_v52 = vpop.permute.xlu1 %84  ;;  %v83_v53 = vpop.permute.xlu0 %82 }
  0x7d   :  { %v305_v55 = vsub.f32 %v1487_v36, %v304_v44  ;;  %v1506_v56 = vsub.f32 %v158_v42, %v206_v46  ;;  %v1508_v57 = vsub.f32 %v152_v43, %v200_v47  ;;  %v1510_v58 = vpack.c.bf16 %v200_v47, %v197_v30 }
  0x7e   :  { %v127_v59 = vsel %vm56_vm1, %v39_v31, %v85_v52  ;;  %v126_v60 = vsel %vm56_vm1, %v38_v32, %v83_v53  ;;  %v1514_v61 = vpack.c.bf16 %v206_v46, %v203_v29  ;;  %v291_v63 = vsub.f32 %v1489_v37, %v290_v45 }
  0x7f   :  { %v306_v62 = vand.u32 4294901760, %v305_v55  ;;  %v311_v0 = vand.u32 4294901760, %v1506_v56  ;;  %v297_v1 = vand.u32 4294901760, %v1508_v57  ;;  %1184 = vmatpush3.bf16.xpose.msra.mxu1 %v1510_v58  ;;  %1256 = vmatpush3.bf16.xpose.msra.mxu0 %v1510_v58  ;;  %v164_v2 = vsel %vm144_vm2, %v127_v59, 0 }
  0x80   :  { %v161_v3 = vsel %vm144_vm2, %v126_v60, 0  ;;  %v89_v5 = vpop.permute.xlu1 %88  ;;  %v87_v6 = vpop.permute.xlu0 %86  ;;  %v1231_v7 = vpack.c.bf16 %v1508_v57, %v1489_v37  ;;  %v1234_v8 = vpack.c.bf16 %v1506_v56, %v1487_v36  ;;  %v212_v11 = vand.u32 4294901760, %v164_v2  ;;  %1185 = vmatprep.subr.bf16.mxu1 %v1373_v4  ;;  %1257 = vmatprep.subr.bf16.mxu0 %v1373_v4 }
  0x81   :  { %v312_v9 = vsub.f32 %v1506_v56, %v311_v0  ;;  %v298_v10 = vsub.f32 %v1508_v57, %v297_v1  ;;  %v209_v12 = vand.u32 4294901760, %v161_v3  ;;  %v129_v13 = vsel %vm56_vm1, %v41_v33, %v89_v5 }
  0x82   :  { %v128_v14 = vsel %vm56_vm1, %v40_v40, %v87_v6  ;;  %v1533_v17 = vpack.c.bf16 %v297_v1, %v290_v45  ;;  %v1535_v19 = vpack.c.bf16 %v311_v0, %v304_v44  ;;  %v1537_v22 = vsub.f32 %v164_v2, %v212_v11 }
  0x83   :  { %v313_v20 = vand.u32 4294901760, %v312_v9  ;;  %v299_v21 = vand.u32 4294901760, %v298_v10  ;;  %v1539_v23 = vsub.f32 %v161_v3, %v209_v12  ;;  %v292_v24 = vand.u32 4294901760, %v291_v63 }
  0x84   :  { %v170_v25 = vsel %vm144_vm2, %v129_v13, 0  ;;  %v167_v26 = vsel %vm144_vm2, %v128_v14, 0  ;;  %v1543_v27 = vpack.c.bf16 %v212_v11, %v209_v12  ;;  %v93_v28 = vpop.permute.xlu1 %92  ;;  %v91_v29 = vpop.permute.xlu0 %90  ;;  %v325_v30 = vand.u32 4294901760, %v1537_v22 }
  0x85   :  { %v318_v31 = vand.u32 4294901760, %v1539_v23  ;;  %v218_v32 = vand.u32 4294901760, %v170_v25  ;;  %v215_v33 = vand.u32 4294901760, %v167_v26  ;;  %v131_v34 = vsel %vm56_vm1, %v43_v41, %v93_v28 }
  0x86   :  { %v130_v35 = vsel %vm56_vm1, %v42_v48, %v91_v29  ;;  %v1549_v38 = vpack.c.bf16 %v299_v21, %v292_v24  ;;  %v1551_v39 = vpack.c.bf16 %v313_v20, %v306_v62  ;;  %v326_v40 = vsub.f32 %v1537_v22, %v325_v30 }
  0x87   :  { %v319_v42 = vsub.f32 %v1539_v23, %v318_v31  ;;  %v1555_v43 = vsub.f32 %v170_v25, %v218_v32  ;;  %v1557_v44 = vsub.f32 %v167_v26, %v215_v33  ;;  %1187 = vmatpush3.bf16.xpose.msra.mxu1 %v1514_v61  ;;  %1259 = vmatpush3.bf16.xpose.msra.mxu0 %v1514_v61  ;;  %v176_v41 = vsel %vm144_vm2, %v131_v34, 0 }
  0x88   :  { %v173_v45 = vsel %vm144_vm2, %v130_v35, 0  ;;  %v1563_v46 = vpack.c.bf16 %v218_v32, %v215_v33  ;;  %v97_v47 = vpop.permute.xlu1 %96  ;;  %v95_v48 = vpop.permute.xlu0 %94  ;;  %v1565_v52 = vpack.c.bf16 %v325_v30, %v318_v31  ;;  %v49_v53 = vmul.f32 %v1464_v15, %v1464_v15  ;;  %1188 = vmatprep.subr.bf16.mxu1 %v1373_v4  ;;  %1260 = vmatprep.subr.bf16.mxu0 %v1373_v4 }
  0x89   :  { %v48_v55 = vmul.f32 %v1469_v16, %v1469_v16  ;;  %v339_v59 = vand.u32 4294901760, %v1555_v43  ;;  %v332_v60 = vand.u32 4294901760, %v1557_v44  ;;  %v224_v62 = vand.u32 4294901760, %v176_v41 }
  0x8a   :  { %v221_v63 = vand.u32 4294901760, %v173_v45  ;;  %v133_v0 = vsel %vm56_vm1, %v1497_v49, %v97_v47  ;;  %v132_v1 = vsel %vm56_vm1, %v1499_v50, %v95_v48  ;;  %v327_v15 = vand.u32 4294901760, %v326_v40 }
  0x8b   :  { %v320_v2 = vand.u32 4294901760, %v319_v42  ;;  %v182_v16 = vsel %vm144_vm2, %v133_v0, 0  ;;  %v179_v3 = vsel %vm144_vm2, %v132_v1, 0  ;;  %v1581_v5 = vsub.f32 %v176_v41, %v224_v62 }
  0x8c   :  { %v1583_v6 = vsub.f32 %v173_v45, %v221_v63  ;;  %v230_v9 = vand.u32 4294901760, %v182_v16  ;;  %v227_v10 = vand.u32 4294901760, %v179_v3  ;;  %v101_v11 = vpop.permute.xlu1 %100  ;;  %v99_v12 = vpop.permute.xlu0 %98  ;;  %v340_v49 = vsub.f32 %v1555_v43, %v339_v59 }
  0x8d   :  { %v333_v50 = vsub.f32 %v1557_v44, %v332_v60  ;;  %v1591_v13 = vpack.c.bf16 %v224_v62, %v221_v63  ;;  %v135_v14 = vsel %vm56_vm1, %v1501_v51, %v101_v11  ;;  %v353_v20 = vand.u32 4294901760, %v1581_v5 }
  0x8e   :  { %v346_v21 = vand.u32 4294901760, %v1583_v6  ;;  %v1597_v24 = vsub.f32 %v182_v16, %v230_v9  ;;  %v1599_v25 = vsub.f32 %v179_v3, %v227_v10  ;;  %v188_v26 = vsel %vm144_vm2, %v135_v14, 0 }
  0x8f   :  { %v134_v28 = vsel %vm56_vm1, %v1503_v54, %v99_v12  ;;  %v1604_v29 = vpack.c.bf16 %v230_v9, %v227_v10  ;;  %v1606_v30 = vpack.c.bf16 %v327_v15, %v320_v2  ;;  %1190 = vmatpush3.bf16.xpose.msra.mxu1 %v1543_v27  ;;  %1262 = vmatpush3.bf16.xpose.msra.mxu0 %v1543_v27  ;;  %v236_v54 = vand.u32 4294901760, %v188_v26 }
  0x90   :  { %v354_v51 = vsub.f32 %v1581_v5, %v353_v20  ;;  %v347_v31 = vsub.f32 %v1583_v6, %v346_v21  ;;  %v367_v32 = vand.u32 4294901760, %v1597_v24  ;;  %v360_v33 = vand.u32 4294901760, %v1599_v25  ;;  %v105_v34 = vpop.permute.xlu1 %104  ;;  %v103_v35 = vpop.permute.xlu0 %102  ;;  %1191 = vmatprep.subr.bf16.mxu1 %v1373_v4  ;;  %1263 = vmatprep.subr.bf16.mxu0 %v1373_v4 }
  0x91   :  { %v185_v40 = vsel %vm144_vm2, %v134_v28, 0  ;;  %v137_v42 = vsel %vm56_vm1, %v49_v53, %v105_v34  ;;  %v136_v41 = vsel %vm56_vm1, %v48_v55, %v103_v35  ;;  %v341_v45 = vand.u32 4294901760, %v340_v49 }
  0x92   :  { %v334_v47 = vand.u32 4294901760, %v333_v50  ;;  %v368_v48 = vsub.f32 %v1597_v24, %v367_v32  ;;  %v361_v62 = vsub.f32 %v1599_v25, %v360_v33  ;;  %v1621_v63 = vsub.f32 %v188_v26, %v236_v54 }
  0x93   :  { %v233_v0 = vand.u32 4294901760, %v185_v40  ;;  %v194_v1 = vsel %vm144_vm2, %v137_v42, 0  ;;  %v191_v15 = vsel %vm144_vm2, %v136_v41, 0  ;;  %v355_v2 = vand.u32 4294901760, %v354_v51 }
  0x94   :  { %v348_v16 = vand.u32 4294901760, %v347_v31  ;;  %v242_v3 = vand.u32 4294901760, %v194_v1  ;;  %v239_v9 = vand.u32 4294901760, %v191_v15  ;;  %v369_v53 = vand.u32 4294901760, %v368_v48 }
  0x95   :  { %v381_v55 = vand.u32 4294901760, %v1621_v63  ;;  %v1626_v10 = vsub.f32 %v185_v40, %v233_v0  ;;  %v1628_v11 = vpack.c.bf16 %v236_v54, %v233_v0  ;;  %v362_v12 = vand.u32 4294901760, %v361_v62 }
  0x96   :  { %v1630_v49 = vsub.f32 %v194_v1, %v242_v3  ;;  %v1632_v50 = vsub.f32 %v191_v15, %v239_v9  ;;  %v1634_v14 = vpack.c.bf16 %v242_v3, %v239_v9  ;;  %v1638_v51 = vpack.c.bf16 %v341_v45, %v334_v47 }
  0x97   :  { %v382_v26 = vsub.f32 %v1621_v63, %v381_v55  ;;  %v374_v28 = vand.u32 4294901760, %v1626_v10  ;;  %1193 = vmatpush3.bf16.xpose.msra.mxu1 %v1563_v46  ;;  %1265 = vmatpush3.bf16.xpose.msra.mxu0 %v1563_v46  ;;  %v1648_v35 = vpack.c.bf16 %v339_v59, %v332_v60  ;;  %v1650_v54 = vpack.c.bf16 %v355_v2, %v348_v16 }
  0x98   :  { %v395_v31 = vand.u32 4294901760, %v1630_v49  ;;  %v388_v34 = vand.u32 4294901760, %v1632_v50  ;;  %1194 = vmatprep.subr.bf16.mxu1 %v1373_v4  ;;  %1266 = vmatprep.subr.bf16.mxu0 %v1373_v4  ;;  %v1655_v41 = vpack.c.bf16 %v353_v20, %v346_v21  ;;  %v1659_v48 = vpack.c.bf16 %v369_v53, %v362_v12  ;;  %v50_v53 = vld [vmem:[%s1817_s1] sm:$0xff] }
  0x99   :  { %v383_v40 = vand.u32 4294901760, %v382_v26  ;;  %v375_v42 = vsub.f32 %v1626_v10, %v374_v28  ;;  %v1661_v62 = vpack.c.bf16 %v367_v32, %v360_v33  ;;  %v1663_v60 = vpack.c.bf16 %v381_v55, %v374_v28  ;;  %v54_v55 = vpop.permute.xlu0 %53 }
  0x9a   :  { %v396_v45 = vsub.f32 %v1630_v49, %v395_v31  ;;  %v389_v47 = vsub.f32 %v1632_v50, %v388_v34  ;;  %v1665_v0 = vpack.c.bf16 %v395_v31, %v388_v34  ;;  %v1237_v2 = vpack.c.bf16 %v1537_v22, %v1539_v23 }
  0x9b   :  { %v376_v59 = vand.u32 4294901760, %v375_v42  ;;  %v1240_v20 = vpack.c.bf16 %v1555_v43, %v1557_v44  ;;  %v1243_v16 = vpack.c.bf16 %v1581_v5, %v1583_v6  ;;  %v1246_v32 = vpack.c.bf16 %v1597_v24, %v1599_v25 }
  0x9c   :  { %v397_v1 = vand.u32 4294901760, %v396_v45  ;;  %v390_v15 = vand.u32 4294901760, %v389_v47  ;;  %v1249_v3 = vpack.c.bf16 %v1621_v63, %v1626_v10  ;;  %v1252_v9 = vpack.c.bf16 %v1630_v49, %v1632_v50  ;;  %v138_v45 = vld [vmem:[%s1819_s3] sm:$0xff]  ;;  %s1377_s3 = smov [#allocation2]  }
  0x9d   :  { %v1671_v21 = vpack.c.bf16 %v383_v40, %v376_v59  ;;  %v57_v12 = vsel %vm56_vm1, %v50_v53, %v54_v55  ;;  %v1376_v47 = vmov 0   ;;  %s862_s25 = sshll.u32 %s1377_s3, 4  ;;  %s863_s25 = int_to_ptr.vmem [resolvable:$true] %s862_s25 }
  0x9e   :  { %v1677_v33 = vpack.c.bf16 %v397_v1, %v390_v15  ;;  %v146_v26 = vsel %vm144_vm2, %v57_v12, 0  ;;  %1342 = vset.pattern.permute.xlu1 %v1376_v47  ;;  %1343 = vset.pattern.permute.xlu0 %v1376_v47  ;;  %s1348_s26 = scalar_lea.vmem %s863_s25, 16  ;;  %s1352_s27 = scalar_lea.vmem %s863_s25, 32 }
  0x9f   :  { %1196 = vmatpush3.bf16.xpose.msra.mxu1 %v1591_v13  ;;  %1268 = vmatpush3.bf16.xpose.msra.mxu0 %v1591_v13  ;;  %v1696_v28 = vand.u32 4294901760, %v146_v26  ;;  %p1349_p0 = scmp.ne.s32.totalorder %s863_s25, %s1348_s26  ;;  %p1353_p1 = scmp.lt.s32.totalorder %s863_s25, %s863_s25 }
  0xa0   :  { %1197 = vmatprep.subr.bf16.mxu1 %v1373_v4  ;;  %1269 = vmatprep.subr.bf16.mxu0 %v1373_v4  ;;  %p1354_p2 = scmp.lt.s32.totalorder %s1352_s27, %s1348_s26 }
  0xa1   :  { %v1701_v31 = vsub.f32 %v146_v26, %v1696_v28  ;;  %141 = vperm.xlu1 %1342, %v138_v45  }
  0xa2   :  { %p1355_p3 = por %p1354_p2, %p1353_p1 }
  0xa3   :  { %v279_v34 = vand.u32 4294901760, %v1701_v31 }
  0xa4   :  { %p1356_p4 = pnand %p1355_p3, %p1349_p0 }
  0xa5   :  { %v280_v40 = vsub.f32 %v1701_v31, %v279_v34 }
  0xa7   :  { %1199 = vmatpush3.bf16.xpose.msra.mxu1 %v1604_v29  ;;  %1271 = vmatpush3.bf16.xpose.msra.mxu0 %v1604_v29  ;;  %v281_v42 = vand.u32 4294901760, %v280_v40 }
  0xa8   :  { %1200 = vmatprep.subr.bf16.mxu1 %v1373_v4  ;;  %1272 = vmatprep.subr.bf16.mxu0 %v1373_v4 }
  0xaf   :  { %1202 = vmatpush3.bf16.xpose.msra.mxu1 %v1628_v11  ;;  %1274 = vmatpush3.bf16.xpose.msra.mxu0 %v1628_v11 }
  0xb0   :  { %1203 = vmatprep.subr.bf16.mxu1 %v1373_v4  ;;  %1275 = vmatprep.subr.bf16.mxu0 %v1373_v4 }
  0xb7   :  { %1205 = vmatpush3.bf16.xpose.msra.mxu1 %v1634_v14  ;;  %1277 = vmatpush3.bf16.xpose.msra.mxu0 %v1634_v14 }
  0xb8   :  { %1206 = vmatprep.subr.bf16.mxu1 %v1373_v4  ;;  %1278 = vmatprep.subr.bf16.mxu0 %v1373_v4 }
  0xbe   :  { %1005 = vmatmul.mubr.f32.vlgmr.msra.gmra.mrb[0].mxu1 %v281_v42  ;;  %1110 = vmatmul.mubr.f32.vlgmr.msra.gmra.mrb[0].mxu0 %v279_v34 }
  0xbf   :  { %1208 = vmatpush3.bf16.xpose.msra.mxu1 %v1549_v38  ;;  %1280 = vmatpush3.bf16.xpose.msra.mxu0 %v1533_v17 }
  0xc0   :  { %1209 = vmatprep.subr.bf16.mxu1 %v1373_v4  ;;  %1281 = vmatprep.subr.bf16.mxu0 %v1373_v4 }
  0xc1   :  { %1039 = vmatprep.mubr.msk.f32.mxu1 %vm1374_vm0, %v1375_v18  ;;  %1144 = vmatprep.mubr.msk.f32.mxu0 %vm1374_vm0, %v1375_v18 }
  0xc7   :  { %1211 = vmatpush3.bf16.xpose.msra.mxu1 %v1551_v39  ;;  %1283 = vmatpush3.bf16.xpose.msra.mxu0 %v1535_v19 }
  0xc8   :  { %1212 = vmatprep.subr.bf16.mxu1 %v1373_v4  ;;  %1284 = vmatprep.subr.bf16.mxu0 %v1373_v4 }
  0xcf   :  { %1214 = vmatpush3.bf16.xpose.msra.mxu1 %v1606_v30  ;;  %1286 = vmatpush3.bf16.xpose.msra.mxu0 %v1565_v52 }
  0xd0   :  { %1215 = vmatprep.subr.bf16.mxu1 %v1373_v4  ;;  %1287 = vmatprep.subr.bf16.mxu0 %v1373_v4 }
  0xd7   :  { %1217 = vmatpush3.bf16.xpose.msra.mxu1 %v1638_v51  ;;  %1289 = vmatpush3.bf16.xpose.msra.mxu0 %v1648_v35 }
  0xd8   :  { %1218 = vmatprep.subr.bf16.mxu1 %v1373_v4  ;;  %1290 = vmatprep.subr.bf16.mxu0 %v1373_v4 }
  0xdf   :  { %1220 = vmatpush3.bf16.xpose.msra.mxu1 %v1650_v54  ;;  %1292 = vmatpush3.bf16.xpose.msra.mxu0 %v1655_v41 }
  0xe0   :  { %1221 = vmatprep.subr.bf16.mxu1 %v1373_v4  ;;  %1293 = vmatprep.subr.bf16.mxu0 %v1373_v4 }
  0xe7   :  { %1223 = vmatpush3.bf16.xpose.msra.mxu1 %v1659_v48  ;;  %1295 = vmatpush3.bf16.xpose.msra.mxu0 %v1661_v62 }
  0xe8   :  { %1224 = vmatprep.subr.bf16.mxu1 %v1373_v4  ;;  %1296 = vmatprep.subr.bf16.mxu0 %v1373_v4 }
  0xef   :  { %1226 = vmatpush3.bf16.xpose.msra.mxu1 %v1671_v21  ;;  %1298 = vmatpush3.bf16.xpose.msra.mxu0 %v1663_v60 }
  0xf0   :  { %1227 = vmatprep.subr.bf16.mxu1 %v1373_v4  ;;  %1299 = vmatprep.subr.bf16.mxu0 %v1373_v4 }
  0xf7   :  { %1229 = vmatpush3.bf16.xpose.msra.mxu1 %v1677_v33  ;;  %1301 = vmatpush3.bf16.xpose.msra.mxu0 %v1665_v0 }
  0xf8   :  { %1230 = vmatprep.subr.bf16.mxu1 %v1373_v4  ;;  %1302 = vmatprep.subr.bf16.mxu0 %v1373_v4 }
  0xfe   :  { %1040 = vmatmul.mubr.f32.vlgmr.msra.gmra.mrb[0].mxu1 %v1696_v28  ;;  %1145 = vmatmul.mubr.f32.vlgmr.msra.gmra.mrb[0].mxu0 %v1696_v28 }
  0xff   :  { %1232 = vmatpush3.bf16.xpose.msra.mxu1 %v1231_v7  ;;  %1304 = vmatpush3.bf16.xpose.msra.mxu0 %v1510_v58 }
 0x100   :  { %1233 = vmatprep.subr.bf16.mxu1 %v1373_v4  ;;  %1305 = vmatprep.subr.bf16.mxu0 %v1373_v4 }
 0x101   :  { %1074 = vmatprep.mubr.msk.f32.mxu1 %vm1374_vm0, %v1375_v18  ;;  %1179 = vmatprep.mubr.msk.f32.mxu0 %vm1374_vm0, %v1375_v18 }
 0x107   :  { %1235 = vmatpush3.bf16.xpose.msra.mxu1 %v1234_v8  ;;  %1307 = vmatpush3.bf16.xpose.msra.mxu0 %v1514_v61 }
 0x108   :  { %1236 = vmatprep.subr.bf16.mxu1 %v1373_v4  ;;  %1308 = vmatprep.subr.bf16.mxu0 %v1373_v4 }
 0x10f   :  { %1238 = vmatpush3.bf16.xpose.msra.mxu1 %v1237_v2  ;;  %1310 = vmatpush3.bf16.xpose.msra.mxu0 %v1543_v27 }
 0x110   :  { %1239 = vmatprep.subr.bf16.mxu1 %v1373_v4  ;;  %1311 = vmatprep.subr.bf16.mxu0 %v1373_v4 }
 0x117   :  { %1241 = vmatpush3.bf16.xpose.msra.mxu1 %v1240_v20  ;;  %1313 = vmatpush3.bf16.xpose.msra.mxu0 %v1563_v46 }
 0x118   :  { %1242 = vmatprep.subr.bf16.mxu1 %v1373_v4  ;;  %1314 = vmatprep.subr.bf16.mxu0 %v1373_v4 }
 0x11f   :  { %1244 = vmatpush3.bf16.xpose.msra.mxu1 %v1243_v16  ;;  %1316 = vmatpush3.bf16.xpose.msra.mxu0 %v1591_v13 }
 0x120   :  { %1245 = vmatprep.subr.bf16.mxu1 %v1373_v4  ;;  %1317 = vmatprep.subr.bf16.mxu0 %v1373_v4  ;;  %v142_v18 = vpop.permute.xlu1 %141 }
 0x127   :  { %1247 = vmatpush3.bf16.xpose.msra.mxu1 %v1246_v32  ;;  %1319 = vmatpush3.bf16.xpose.msra.mxu0 %v1604_v29 }
 0x128   :  { %1248 = vmatprep.subr.bf16.mxu1 %v1373_v4  ;;  %1320 = vmatprep.subr.bf16.mxu0 %v1373_v4 }
 0x12f   :  { %1250 = vmatpush3.bf16.xpose.msra.mxu1 %v1249_v3  ;;  %1322 = vmatpush3.bf16.xpose.msra.mxu0 %v1628_v11 }
 0x130   :  { %1251 = vmatprep.subr.bf16.mxu1 %v1373_v4  ;;  %1323 = vmatprep.subr.bf16.mxu0 %v1373_v4 }
 0x137   :  { %1253 = vmatpush3.bf16.xpose.msra.mxu1 %v1252_v9  ;;  %1325 = vmatpush3.bf16.xpose.msra.mxu0 %v1634_v14 }
 0x13e   :  { %1075 = vmatmul.mubr.f32.vlgmr.msra.gmra.mrb[0].mxu1 %v1701_v31  ;;  %1180 = vmatmul.mubr.f32.vlgmr.msra.gmra.mrb[0].mxu0 %v1696_v28 }
 0x211   :  { %v538_v36 = vpop.f32.mrb[0].mxu1  ;;  %v833_v37 = vpop.f32.mrb[0].mxu0 }
 0x212   :  { %v1326_v56 = vadd.f32 %v538_v36, %v142_v18  ;;  %v1076_v57 = vpop.f32.mrb[1].mxu1  ;;  %v1181_v58 = vpop.f32.mrb[1].mxu0 }
 0x214   :  { %v1327_v61 = vadd.f32 %v1326_v56, %v833_v37 }
 0x216   :  { %v837_v7 = vrot.slane %v1327_v61, 4 }
 0x218   :  { %v838_v8 = vmax.f32 %v1327_v61, %v837_v7 }
 0x21a   :  { %v839_v4 = vrot.slane %v838_v8, 2 }
 0x21c   :  { %v840_v17 = vmax.f32 %v838_v8, %v839_v4 }
 0x21e   :  { %v841_v19 = vrot.slane %v840_v17, 1 }
 0x220   :  { %v842_v22 = vmax.f32 %v840_v17, %v841_v19 }
 0x222   :  { %v843_v23 = vsub.f32 %v1327_v61, %v842_v22 }
 0x224   :  { %v844_v27 = vmul.f32 1.442695, %v843_v23 }
 0x226   :  { %1344 = vpow2.f32 %v844_v27 }
 0x230   :  { %v1345_v38 = vpop.eup %1344 }
 0x231   :  { %v846_v39 = vrot.slane %v1345_v38, 4 }
 0x233   :  { %v847_v43 = vadd.f32 %v1345_v38, %v846_v39 }
 0x235   :  { %v848_v44 = vrot.slane %v847_v43, 2 }
 0x237   :  { %v849_v46 = vadd.f32 %v848_v44, %v847_v43 }
 0x239   :  { %v850_v52 = vrot.slane %v849_v46, 1 }
 0x23b   :  { %v851_v5 = vadd.f32 %v850_v52, %v849_v46 }
 0x23d   :  { %1346 = vlog2.f32 %v851_v5 }
 0x247   :  { %v1347_v6 = vpop.eup %1346 }
 0x248   :  { %v853_v13 = vmul.f32 0.6931472, %v1347_v6 }
 0x24a   :  { %v854_v24 = vadd.f32 %v853_v13, %v842_v22 }
 0x24c   :  { %855 = vst [vmem:[#allocation2] sm:$0x1] %v854_v24 }
 0x24d   :  { %1359 = shalt.err (!%p1356_p4)
}
 0x24e   :  { %s1360_s30 = scalar_lea.hbm %s1820_s4, 16 }
 0x24f   :  { %p1361_p5 = scmp.ne.s32.totalorder %s1820_s4, %s1360_s30  ;;  %p1364_p6 = scmp.lt.u32.totalorder %s1360_s30, %s1820_s4 }
 0x251   :  { %p1366_p7 = pnand %p1364_p6, %p1361_p5 }
 0x253   :  { %1369 = shalt.err (!%p1366_p7)
}
 0x254   :  { %865 = dma.vmem_to_hbm [thread:$0]  %s863_s25, 16, %s1820_s4, [#allocation3]  }
 0x255   :  { %1370 = dma.done.wait [#allocation3], 16  }
 0x256   :  { %1371 = vsyncadd [#allocation3], 4294967280 }
 0x257   :  { %869 = vsyncpa [#allocation3], 1 }

// kernel: tpu_custom_call.1
= control target key start
LH: loop header
LB: loop body
LE: loop exit
PB: predicated region body
PF: predicated region fallthrough
CT: control target
= control target key end

     0   :  { %v476_v7 = vmov 0.0|0.0   ;;  %s477_s5 = smov 32   ;;  %s649_s0 = inlined_call_operand.vmem [shape: f32[128,32], index: 0, kind: input, shape index: {}]   ;;  %s650_s1 = inlined_call_operand.vmem [shape: f32[8,32], index: 1, kind: input, shape index: {}]   ;;  %s651_s2 = inlined_call_operand.vmem [shape: f32[8,32], index: 2, kind: input, shape index: {}]   ;;  %s652_s3 = inlined_call_operand.vmem [shape: f32[8,1], index: 3, kind: input, shape index: {}]   ;;  %s653_s4 = inlined_call_operand.hbm [shape: f32[1,128], index: 4, kind: output, shape index: {}]  }
   0x1   :  { %v18_v0 = vld [vmem:[%s649_s0] sm:$0xff]  ;;  %v19_v1 = vld [vmem:[%s649_s0 + $0x8] sm:$0xff]  ;;  %v20_v2 = vld [vmem:[%s649_s0 + $0x10] sm:$0xff]  ;;  %368 = vmatprep.subr.bf16.mxu0 %v476_v7 }
   0x2   :  { %v406_v3 = vpack.i.bf16 %v19_v1, %v18_v0  ;;  %v21_v4 = vld [vmem:[%s649_s0 + $0x18] sm:$0xff]  ;;  %v22_v5 = vld [vmem:[%s649_s0 + $0x20] sm:$0xff]  ;;  %v23_v6 = vld [vmem:[%s649_s0 + $0x28] sm:$0xff] }
   0x3   :  { %v416_v8 = vpack.i.bf16 %v23_v6, %v22_v5  ;;  %v24_v9 = vld [vmem:[%s649_s0 + $0x30] sm:$0xff]  ;;  %v25_v10 = vld [vmem:[%s649_s0 + $0x38] sm:$0xff]  ;;  %v411_v11 = vpack.i.bf16 %v21_v4, %v20_v2  ;;  %v26_v13 = vld [vmem:[%s649_s0 + $0x40] sm:$0xff] }
   0x4   :  { %407 = vrot.lane.b32.xlu0 %v406_v3, %s477_s5  ;;  %v421_v12 = vpack.i.bf16 %v25_v10, %v24_v9  ;;  %v27_v14 = vld [vmem:[%s649_s0 + $0x48] sm:$0xff]  ;;  %v541_v15 = vld [vmem:[%s649_s0 + $0x50] sm:$0xff]  ;;  %v29_v16 = vld [vmem:[%s649_s0 + $0x58] sm:$0xff] }
   0x5   :  { %417 = vrot.lane.b32.xlu1 %v416_v8, %s477_s5 }
   0x6   :  { %9 = vsyncpa [#allocation3], 0  ;;  %v426_v17 = vpack.i.bf16 %v27_v14, %v26_v13  ;;  %v431_v18 = vpack.i.bf16 %v29_v16, %v541_v15  ;;  %v550_v19 = vld [vmem:[%s649_s0 + $0x60] sm:$0xff]  ;;  %v555_v20 = vld [vmem:[%s649_s0 + $0x68] sm:$0xff]  ;;  %vm478_vm0 = vmmov 0   ;;  %v479_v26 = vmov 0.0  }
   0x7   :  { %v560_v21 = vld [vmem:[%s649_s0 + $0x70] sm:$0xff]  ;;  %v565_v22 = vld [vmem:[%s649_s0 + $0x78] sm:$0xff]  ;;  %v436_v23 = vpack.i.bf16 %v555_v20, %v550_v19  ;;  %v51_v25 = vld [vmem:[%s651_s2] sm:$0xff]  ;;  %365 = vmatprep.mubr.msk.f32.mxu0 %vm478_vm0, %v479_v26  ;;  %v480_v28 = vmov 0   ;;  %v35_v29 = vmul.f32 %v19_v1, %v19_v1  ;;  %v34_v30 = vmul.f32 %v18_v0, %v18_v0 }
   0x8   :  { %412 = vrot.lane.b32.xlu0 %v411_v11, %s477_s5  ;;  %v441_v24 = vpack.i.bf16 %v565_v22, %v560_v21  ;;  %v138_v27 = vld [vmem:[%s652_s3] sm:$0xff]  ;;  %446 = vset.pattern.permute.xlu1 %v480_v28  ;;  %v39_v31 = vmul.f32 %v23_v6, %v23_v6  ;;  %v38_v32 = vmul.f32 %v22_v5, %v22_v5  ;;  %vm56_vm1 = vcmask 261120  }
   0x9   :  { %422 = vrot.lane.b32.xlu1 %v421_v12, %s477_s5  ;;  %447 = vset.pattern.permute.xlu0 %v480_v28  ;;  %vm144_vm2 = vcmask 523264   ;;  %v36_v37 = vmul.f32 %v20_v2, %v20_v2  ;;  %v37_v40 = vmul.f32 %v21_v4, %v21_v4  ;;  %v41_v41 = vmul.f32 %v25_v10, %v25_v10 }
   0xa   :  { %vm581_vm3 = vmpackc.low %vm144_vm2, %vm144_vm2  ;;  %v40_v45 = vmul.f32 %v24_v9, %v24_v9  ;;  %v43_v54 = vmul.f32 %v27_v14, %v27_v14  ;;  %v42_v57 = vmul.f32 %v26_v13, %v26_v13  ;;  %v45_v58 = vmul.f32 %v29_v16, %v29_v16 }
   0xb   :  { %v44_v61 = vmul.f32 %v541_v15, %v541_v15  ;;  %v47_v6 = vmul.f32 %v555_v20, %v555_v20  ;;  %v46_v10 = vmul.f32 %v550_v19, %v550_v19  ;;  %v49_v11 = vmul.f32 %v565_v22, %v565_v22 }
   0xc   :  { %427 = vrot.lane.b32.xlu0 %v426_v17, %s477_s5  ;;  %v48_v14 = vmul.f32 %v560_v21, %v560_v21 }
   0xd   :  { %432 = vrot.lane.b32.xlu1 %v431_v18, %s477_s5 }
  0x10   :  { %437 = vrot.lane.b32.xlu0 %v436_v23, %s477_s5 }
  0x11   :  { %442 = vrot.lane.b32.xlu1 %v441_v24, %s477_s5 }
  0x14   :  { %53 = vrot.lane.b32.xlu0 %v51_v25, %s477_s5 }
  0x15   :  { %141 = vperm.xlu1 %446, %v138_v27  }
  0x76   :  { %v408_v33 = vpop.permute.xlu0 %407 }
  0x77   :  { %v410_v34 = vunpack.i.h.bf16 %v408_v33  ;;  %v409_v35 = vunpack.i.l.bf16 %v408_v33  ;;  %v418_v36 = vpop.permute.xlu1 %417 }
  0x78   :  { %v420_v38 = vunpack.i.h.bf16 %v418_v36  ;;  %v419_v39 = vunpack.i.l.bf16 %v418_v36 }
  0x79   :  { %v122_v42 = vsel %vm56_vm1, %v34_v30, %v409_v35  ;;  %v123_v43 = vsel %vm56_vm1, %v35_v29, %v410_v34 }
  0x7a   :  { %v369_v46 = vpack.c.bf16 %v123_v43, %v122_v42  ;;  %v413_v47 = vpop.permute.xlu0 %412  ;;  %v127_v48 = vsel %vm56_vm1, %v39_v31, %v420_v38  ;;  %v126_v49 = vsel %vm56_vm1, %v38_v32, %v419_v39  ;;  %v50_v31 = vld [vmem:[%s650_s1] sm:$0xff]  ;;  %s481_s1 = smov [#allocation2]  }
  0x7b   :  { %v415_v50 = vunpack.i.h.bf16 %v413_v47  ;;  %v414_v51 = vunpack.i.l.bf16 %v413_v47  ;;  %v377_v52 = vpack.c.bf16 %v127_v48, %v126_v49  ;;  %v423_v53 = vpop.permute.xlu1 %422  ;;  %s291_s25 = sshll.u32 %s481_s1, 4  ;;  %s292_s25 = int_to_ptr.vmem [resolvable:$true] %s291_s25 }
  0x7c   :  { %371 = vmatpush3.bf16.xpose.msk.msra.mxu0 %vm581_vm3, %v369_v46  ;;  %v425_v55 = vunpack.i.h.bf16 %v423_v53  ;;  %v424_v56 = vunpack.i.l.bf16 %v423_v53  ;;  %s452_s26 = scalar_lea.vmem %s292_s25, 16  ;;  %s456_s27 = scalar_lea.vmem %s292_s25, 32 }
  0x7d   :  { %v125_v59 = vsel %vm56_vm1, %v37_v40, %v415_v50  ;;  %v124_v60 = vsel %vm56_vm1, %v36_v37, %v414_v51  ;;  %372 = vmatprep.subr.bf16.mxu0 %v476_v7  ;;  %p453_p0 = scmp.ne.s32.totalorder %s292_s25, %s452_s26  ;;  %p457_p1 = scmp.lt.s32.totalorder %s292_s25, %s292_s25 }
  0x7e   :  { %v373_v62 = vpack.c.bf16 %v125_v59, %v124_v60  ;;  %v129_v63 = vsel %vm56_vm1, %v41_v41, %v425_v55  ;;  %v128_v0 = vsel %vm56_vm1, %v40_v45, %v424_v56  ;;  %v428_v1 = vpop.permute.xlu0 %427  ;;  %p458_p2 = scmp.lt.s32.totalorder %s456_s27, %s452_s26 }
  0x7f   :  { %v381_v2 = vpack.c.bf16 %v129_v63, %v128_v0  ;;  %v430_v3 = vunpack.i.h.bf16 %v428_v1  ;;  %v429_v4 = vunpack.i.l.bf16 %v428_v1  ;;  %v433_v5 = vpop.permute.xlu1 %432 }
  0x80   :  { %v435_v8 = vunpack.i.h.bf16 %v433_v5  ;;  %v434_v9 = vunpack.i.l.bf16 %v433_v5  ;;  %p459_p3 = por %p458_p2, %p457_p1 }
  0x81   :  { %v131_v12 = vsel %vm56_vm1, %v43_v54, %v430_v3  ;;  %v130_v13 = vsel %vm56_vm1, %v42_v57, %v429_v4 }
  0x82   :  { %v385_v15 = vpack.c.bf16 %v131_v12, %v130_v13  ;;  %v133_v16 = vsel %vm56_vm1, %v45_v58, %v435_v8  ;;  %v132_v17 = vsel %vm56_vm1, %v44_v61, %v434_v9  ;;  %v438_v18 = vpop.permute.xlu0 %437  ;;  %p460_p4 = pnand %p459_p3, %p453_p0 }
  0x83   :  { %v389_v20 = vpack.c.bf16 %v133_v16, %v132_v17  ;;  %v440_v23 = vunpack.i.h.bf16 %v438_v18  ;;  %v439_v24 = vunpack.i.l.bf16 %v438_v18  ;;  %v443_v19 = vpop.permute.xlu1 %442 }
  0x84   :  { %375 = vmatpush3.bf16.xpose.msk.msra.mxu0 %vm581_vm3, %v373_v62  ;;  %v445_v22 = vunpack.i.h.bf16 %v443_v19  ;;  %v444_v25 = vunpack.i.l.bf16 %v443_v19 }
  0x85   :  { %376 = vmatprep.subr.bf16.mxu0 %v476_v7  ;;  %v135_v26 = vsel %vm56_vm1, %v47_v6, %v440_v23  ;;  %v134_v21 = vsel %vm56_vm1, %v46_v10, %v439_v24 }
  0x86   :  { %v393_v27 = vpack.c.bf16 %v135_v26, %v134_v21  ;;  %v137_v28 = vsel %vm56_vm1, %v49_v11, %v445_v22  ;;  %v136_v29 = vsel %vm56_vm1, %v48_v14, %v444_v25  ;;  %v54_v32 = vpop.permute.xlu0 %53 }
  0x87   :  { %v397_v30 = vpack.c.bf16 %v137_v28, %v136_v29  ;;  %v57_v33 = vsel %vm56_vm1, %v50_v31, %v54_v32 }
  0x8c   :  { %379 = vmatpush3.bf16.xpose.msk.msra.mxu0 %vm581_vm3, %v377_v52 }
  0x8d   :  { %380 = vmatprep.subr.bf16.mxu0 %v476_v7 }
  0x94   :  { %383 = vmatpush3.bf16.xpose.msk.msra.mxu0 %vm581_vm3, %v381_v2  ;;  %v142_v34 = vpop.permute.xlu1 %141 }
  0x95   :  { %384 = vmatprep.subr.bf16.mxu0 %v476_v7 }
  0x9c   :  { %387 = vmatpush3.bf16.xpose.msk.msra.mxu0 %vm581_vm3, %v385_v15 }
  0x9d   :  { %388 = vmatprep.subr.bf16.mxu0 %v476_v7 }
  0xa4   :  { %391 = vmatpush3.bf16.xpose.msk.msra.mxu0 %vm581_vm3, %v389_v20 }
  0xa5   :  { %392 = vmatprep.subr.bf16.mxu0 %v476_v7 }
  0xac   :  { %395 = vmatpush3.bf16.xpose.msk.msra.mxu0 %vm581_vm3, %v393_v27 }
  0xad   :  { %396 = vmatprep.subr.bf16.mxu0 %v476_v7 }
  0xb4   :  { %399 = vmatpush3.bf16.xpose.msk.msra.mxu0 %vm581_vm3, %v397_v30 }
  0xbb   :  { %366 = vmatmul.mubr.msk.f32.vlgmr.msra.gmra.mrb[0].mxu0 %vm144_vm2, %v57_v33 }
 0x18e   :  { %v262_v35 = vpop.f32.mrb[0].mxu0 }
 0x18f   :  { %v263_v36 = vadd.f32 %v262_v35, %v142_v34  ;;  %v367_v37 = vpop.f32.mrb[1].mxu0 }
 0x191   :  { %v266_v38 = vrot.slane %v263_v36, 4 }
 0x193   :  { %v267_v39 = vmax.f32 %v263_v36, %v266_v38 }
 0x195   :  { %v268_v40 = vrot.slane %v267_v39, 2 }
 0x197   :  { %v269_v7 = vmax.f32 %v267_v39, %v268_v40 }
 0x199   :  { %v270_v41 = vrot.slane %v269_v7, 1 }
 0x19b   :  { %v271_v42 = vmax.f32 %v269_v7, %v270_v41 }
 0x19d   :  { %v272_v43 = vsub.f32 %v263_v36, %v271_v42 }
 0x19f   :  { %v273_v44 = vmul.f32 1.442695, %v272_v43 }
 0x1a1   :  { %448 = vpow2.f32 %v273_v44 }
 0x1ab   :  { %v449_v45 = vpop.eup %448 }
 0x1ac   :  { %v275_v46 = vrot.slane %v449_v45, 4 }
 0x1ae   :  { %v276_v47 = vadd.f32 %v449_v45, %v275_v46 }
 0x1b0   :  { %v277_v48 = vrot.slane %v276_v47, 2 }
 0x1b2   :  { %v278_v49 = vadd.f32 %v277_v48, %v276_v47 }
 0x1b4   :  { %v279_v50 = vrot.slane %v278_v49, 1 }
 0x1b6   :  { %v280_v51 = vadd.f32 %v279_v50, %v278_v49 }
 0x1b8   :  { %450 = vlog2.f32 %v280_v51 }
 0x1c2   :  { %v451_v52 = vpop.eup %450 }
 0x1c3   :  { %v282_v53 = vmul.f32 0.6931472, %v451_v52 }
 0x1c5   :  { %v283_v54 = vadd.f32 %v282_v53, %v271_v42 }
 0x1c7   :  { %284 = vst [vmem:[#allocation2] sm:$0x1] %v283_v54 }
 0x1c8   :  { %463 = shalt.err (!%p460_p4)
}
 0x1c9   :  { %s464_s30 = scalar_lea.hbm %s653_s4, 16 }
 0x1ca   :  { %p465_p5 = scmp.ne.s32.totalorder %s653_s4, %s464_s30  ;;  %p468_p6 = scmp.lt.u32.totalorder %s464_s30, %s653_s4 }
 0x1cc   :  { %p470_p7 = pnand %p468_p6, %p465_p5 }
 0x1ce   :  { %473 = shalt.err (!%p470_p7)
}
 0x1cf   :  { %294 = dma.vmem_to_hbm [thread:$0]  %s292_s25, 16, %s653_s4, [#allocation3]  }
 0x1d0   :  { %474 = dma.done.wait [#allocation3], 16  }
 0x1d1   :  { %475 = vsyncadd [#allocation3], 4294967280 }
 0x1d2   :  { %298 = vsyncpa [#allocation3], 1 }

// kernel: tpu_custom_call.1
= control target key start
LH: loop header
LB: loop body
LE: loop exit
PB: predicated region body
PF: predicated region fallthrough
CT: control target
= control target key end

     0   :  { %vm52_vm0 = vcmask 261120   ;;  %v3184_v3 = vmov 0.0|0.0   ;;  %s3177_s0 = inlined_call_operand.vmem [shape: f32[128,32], index: 0, kind: input, shape index: {}]   ;;  %s3178_s1 = inlined_call_operand.vmem [shape: f32[8,32], index: 1, kind: input, shape index: {}]   ;;  %s3179_s2 = inlined_call_operand.vmem [shape: f32[8,32], index: 2, kind: input, shape index: {}]   ;;  %s3180_s3 = inlined_call_operand.vmem [shape: f32[8,1], index: 3, kind: input, shape index: {}]   ;;  %s3181_s4 = inlined_call_operand.hbm [shape: f32[1,128], index: 4, kind: output, shape index: {}]  }
   0x1   :  { %v2456_v0 = vld [vmem:[%s3177_s0] sm:$0xff]  ;;  %v2461_v1 = vld [vmem:[%s3177_s0 + $0x8] sm:$0xff]  ;;  %v2466_v2 = vld [vmem:[%s3177_s0 + $0x10] sm:$0xff]  ;;  %2101 = vmatprep.subr.bf16.mxu0 %v3184_v3  ;;  %2125 = vmatprep.subr.bf16.mxu1 %v3184_v3 }
   0x2   :  { %v57_v4 = vsel %vm52_vm0, %v2456_v0, 0  ;;  %v60_v5 = vsel %vm52_vm0, %v2461_v1, 0  ;;  %v2477_v6 = vld [vmem:[%s3177_s0 + $0x18] sm:$0xff]  ;;  %v2482_v9 = vld [vmem:[%s3177_s0 + $0x20] sm:$0xff]  ;;  %v2487_v10 = vld [vmem:[%s3177_s0 + $0x28] sm:$0xff]  ;;  %v63_v11 = vsel %vm52_vm0, %v2466_v2, 0 }
   0x3   :  { %v105_v7 = vand.u32 4294901760, %v57_v4  ;;  %v108_v8 = vand.u32 4294901760, %v60_v5  ;;  %v66_v12 = vsel %vm52_vm0, %v2477_v6, 0  ;;  %v111_v16 = vand.u32 4294901760, %v63_v11 }
   0x4   :  { %v114_v17 = vand.u32 4294901760, %v66_v12  ;;  %v69_v18 = vsel %vm52_vm0, %v2482_v9, 0  ;;  %v72_v19 = vsel %vm52_vm0, %v2487_v10, 0 }
   0x5   :  { %v2493_v13 = vpack.c.bf16 %v108_v8, %v105_v7  ;;  %v2495_v14 = vsub.f32 %v57_v4, %v105_v7  ;;  %v2497_v15 = vsub.f32 %v60_v5, %v108_v8  ;;  %v2504_v20 = vsub.f32 %v63_v11, %v111_v16 }
   0x6   :  { %v117_v23 = vand.u32 4294901760, %v69_v18 }
   0x7   :  { %2103 = vmatpush3.bf16.xpose.msra.mxu0 %v2493_v13  ;;  %v198_v21 = vand.u32 4294901760, %v2495_v14  ;;  %v205_v22 = vand.u32 4294901760, %v2497_v15 }
   0x8   :  { %9 = vsyncpa [#allocation3], 0  ;;  %2104 = vmatprep.subr.bf16.mxu0 %v3184_v3  ;;  %v2509_v24 = vsub.f32 %v66_v12, %v114_v17  ;;  %v120_v25 = vand.u32 4294901760, %v72_v19  ;;  %v2514_v26 = vld [vmem:[%s3177_s0 + $0x30] sm:$0xff]  ;;  %v212_v29 = vand.u32 4294901760, %v2504_v20  ;;  %v2526_v30 = vld [vmem:[%s3177_s0 + $0x38] sm:$0xff]  ;;  %v2528_v31 = vpack.c.bf16 %v114_v17, %v111_v16 }
   0x9   :  { %v199_v27 = vsub.f32 %v2495_v14, %v198_v21  ;;  %v206_v28 = vsub.f32 %v2497_v15, %v205_v22  ;;  %v2530_v32 = vsub.f32 %v69_v18, %v117_v23  ;;  %v75_v38 = vsel %vm52_vm0, %v2514_v26, 0  ;;  %v2553_v48 = vld [vmem:[%s3177_s0 + $0x40] sm:$0xff]  ;;  %v2558_v49 = vld [vmem:[%s3177_s0 + $0x48] sm:$0xff]  ;;  %v2584_v4 = vld [vmem:[%s3177_s0 + $0x50] sm:$0xff] }
   0xa   :  { %v2532_v33 = vsub.f32 %v72_v19, %v120_v25  ;;  %v219_v34 = vand.u32 4294901760, %v2509_v24  ;;  %v213_v37 = vsub.f32 %v2504_v20, %v212_v29  ;;  %v78_v40 = vsel %vm52_vm0, %v2526_v30, 0  ;;  %v2589_v5 = vld [vmem:[%s3177_s0 + $0x58] sm:$0xff] }
   0xb   :  { %v200_v35 = vand.u32 4294901760, %v199_v27  ;;  %v207_v36 = vand.u32 4294901760, %v206_v28  ;;  %v123_v42 = vand.u32 4294901760, %v75_v38  ;;  %v226_v43 = vand.u32 4294901760, %v2530_v32  ;;  %v2606_v27 = vld [vmem:[%s3177_s0 + $0x60] sm:$0xff] }
   0xc   :  { %v220_v39 = vsub.f32 %v2509_v24, %v219_v34  ;;  %v233_v44 = vand.u32 4294901760, %v2532_v33  ;;  %v214_v45 = vand.u32 4294901760, %v213_v37  ;;  %v126_v47 = vand.u32 4294901760, %v78_v40 }
   0xd   :  { %v2126_v41 = vpack.c.bf16 %v207_v36, %v200_v35  ;;  %v2560_v50 = vsub.f32 %v75_v38, %v123_v42  ;;  %v227_v51 = vsub.f32 %v2530_v32, %v226_v43  ;;  %v2568_v53 = vpack.c.bf16 %v120_v25, %v117_v23 }
   0xe   :  { %v221_v46 = vand.u32 4294901760, %v220_v39  ;;  %v234_v52 = vsub.f32 %v2532_v33, %v233_v44  ;;  %v2570_v55 = vsub.f32 %v78_v40, %v126_v47  ;;  %v81_v56 = vsel %vm52_vm0, %v2553_v48, 0  ;;  %v2620_v39 = vld [vmem:[%s3177_s0 + $0x68] sm:$0xff] }
   0xf   :  { %2106 = vmatpush3.bf16.xpose.msra.mxu0 %v2528_v31  ;;  %2127 = vmatpush3.bf16.xpose.msra.mxu1 %v2126_v41  ;;  %v84_v57 = vsel %vm52_vm0, %v2558_v49, 0  ;;  %v228_v58 = vand.u32 4294901760, %v227_v51  ;;  %v129_v60 = vand.u32 4294901760, %v81_v56  ;;  %v240_v61 = vand.u32 4294901760, %v2560_v50 }
  0x10   :  { %2107 = vmatprep.subr.bf16.mxu0 %v3184_v3  ;;  %2128 = vmatprep.subr.bf16.mxu1 %v3184_v3  ;;  %v2129_v54 = vpack.c.bf16 %v221_v46, %v214_v45  ;;  %v235_v59 = vand.u32 4294901760, %v234_v52  ;;  %v132_v62 = vand.u32 4294901760, %v84_v57  ;;  %v247_v63 = vand.u32 4294901760, %v2570_v55 }
  0x11   :  { %v2591_v7 = vpack.c.bf16 %v126_v47, %v123_v42  ;;  %v2593_v11 = vsub.f32 %v81_v56, %v129_v60  ;;  %v241_v12 = vsub.f32 %v2560_v50, %v240_v61  ;;  %v87_v18 = vsel %vm52_vm0, %v2584_v4, 0 }
  0x12   :  { %v2132_v8 = vpack.c.bf16 %v235_v59, %v228_v58  ;;  %v2596_v16 = vsub.f32 %v84_v57, %v132_v62  ;;  %v248_v17 = vsub.f32 %v2570_v55, %v247_v63  ;;  %v90_v19 = vsel %vm52_vm0, %v2589_v5, 0 }
  0x13   :  { %v135_v23 = vand.u32 4294901760, %v87_v18  ;;  %v138_v25 = vand.u32 4294901760, %v90_v19  ;;  %vm2424_vm1 = vmmov 0   ;;  %v3182_v28 = vmov 0.0  }
  0x14   :  { %1713 = vmatprep.mubr.msk.f32.mxu0 %vm2424_vm1, %v3182_v28  ;;  %1748 = vmatprep.mubr.msk.f32.mxu1 %vm2424_vm1, %v3182_v28  ;;  %v242_v35 = vand.u32 4294901760, %v241_v12  ;;  %v249_v36 = vand.u32 4294901760, %v248_v17  ;;  %v254_v37 = vand.u32 4294901760, %v2593_v11  ;;  %v261_v38 = vand.u32 4294901760, %v2596_v16 }
  0x15   :  { %v93_v40 = vsel %vm52_vm0, %v2606_v27, 0  ;;  %v2624_v41 = vpack.c.bf16 %v132_v62, %v129_v60  ;;  %v2626_v42 = vsub.f32 %v87_v18, %v135_v23  ;;  %v2628_v45 = vsub.f32 %v90_v19, %v138_v25 }
  0x16   :  { %v2135_v46 = vpack.c.bf16 %v249_v36, %v242_v35  ;;  %v255_v47 = vsub.f32 %v2593_v11, %v254_v37  ;;  %v262_v51 = vsub.f32 %v2596_v16, %v261_v38  ;;  %v96_v52 = vsel %vm52_vm0, %v2620_v39, 0 }
  0x17   :  { %2109 = vmatpush3.bf16.xpose.msra.mxu0 %v2568_v53  ;;  %2130 = vmatpush3.bf16.xpose.msra.mxu1 %v2129_v54  ;;  %v141_v54 = vand.u32 4294901760, %v93_v40  ;;  %v2638_v56 = vpack.c.bf16 %v205_v22, %v198_v21  ;;  %v2644_v57 = vpack.c.bf16 %v219_v34, %v212_v29  ;;  %v2650_v58 = vpack.c.bf16 %v233_v44, %v226_v43  ;;  %v2669_v43 = vld [vmem:[%s3177_s0 + $0x78] sm:$0xff] }
  0x18   :  { %2110 = vmatprep.subr.bf16.mxu0 %v3184_v3  ;;  %2131 = vmatprep.subr.bf16.mxu1 %v3184_v3  ;;  %v2652_v59 = vpack.c.bf16 %v247_v63, %v240_v61  ;;  %v144_v60 = vand.u32 4294901760, %v96_v52  ;;  %v268_v62 = vand.u32 4294901760, %v2626_v42  ;;  %v275_v21 = vand.u32 4294901760, %v2628_v45 }
  0x19   :  { %v2656_v22 = vpack.c.bf16 %v261_v38, %v254_v37  ;;  %v256_v29 = vand.u32 4294901760, %v255_v47  ;;  %v263_v34 = vand.u32 4294901760, %v262_v51  ;;  %v2673_v61 = vpack.c.bf16 %v138_v25, %v135_v23  ;;  %v51_v23 = vld [vmem:[%s3179_s2] sm:$0xff] }
  0x1a   :  { %v2671_v44 = vpack.c.bf16 %v275_v21, %v268_v62  ;;  %v2675_v63 = vsub.f32 %v93_v40, %v141_v54  ;;  %v2677_v12 = vsub.f32 %v96_v52, %v144_v60  ;;  %v269_v19 = vsub.f32 %v2626_v42, %v268_v62 }
  0x1b   :  { %v2138_v18 = vpack.c.bf16 %v263_v34, %v256_v29  ;;  %v276_v35 = vsub.f32 %v2628_v45, %v275_v21  ;;  %v102_v36 = vsel %vm52_vm0, %v2669_v43, 0  ;;  %v54_v51 = vsel %vm52_vm0, %v51_v23, 0 }
  0x1c   :  { %v150_v37 = vand.u32 4294901760, %v102_v36  ;;  %v282_v38 = vand.u32 4294901760, %v2675_v63  ;;  %v289_v40 = vand.u32 4294901760, %v2677_v12  ;;  %v2700_v29 = vand.u32 4294901760, %v54_v51 }
  0x1d   :  { %v277_v47 = vand.u32 4294901760, %v276_v35  ;;  %v2702_v34 = vpack.c.bf16 %v144_v60, %v141_v54 }
  0x1e   :  { %v2694_v52 = vpack.c.bf16 %v289_v40, %v282_v38  ;;  %v2698_v21 = vsub.f32 %v102_v36, %v150_v37  ;;  %v2707_v35 = vsub.f32 %v54_v51, %v2700_v29  ;;  %v35_v51 = vmul.f32 %v2461_v1, %v2461_v1 }
  0x1f   :  { %2112 = vmatpush3.bf16.xpose.msra.mxu0 %v2591_v7  ;;  %2133 = vmatpush3.bf16.xpose.msra.mxu1 %v2132_v8  ;;  %v2662_v8 = vld [vmem:[%s3177_s0 + $0x70] sm:$0xff]  ;;  %v2150_v1 = vpack.c.bf16 %v2497_v15, %v2495_v14  ;;  %v3202_v15 = vmov 0.0  }
  0x20   :  { %2113 = vmatprep.subr.bf16.mxu0 %v3184_v3  ;;  %2134 = vmatprep.subr.bf16.mxu1 %v3184_v3  ;;  %v99_v17 = vsel %vm52_vm0, %v2662_v8, 0  ;;  %3200 = vst [vmem:[#allocation5_spill] sm:$0xff] %v2694_v52  ;;  %v3201_v52 = vmov 0.0|0.0   ;;  %v3186_v60 = vand.u32 4294901760, %v2707_v35 }
  0x21   :  { %v147_v25 = vand.u32 4294901760, %v99_v17 }
  0x23   :  { %v2696_v62 = vsub.f32 %v99_v17, %v147_v25 }
  0x25   :  { %v296_v23 = vand.u32 4294901760, %v2696_v62 }
  0x27   :  { %2115 = vmatpush3.bf16.xpose.msra.mxu0 %v2624_v41  ;;  %2136 = vmatpush3.bf16.xpose.msra.mxu1 %v2135_v46  ;;  %v270_v46 = vand.u32 4294901760, %v269_v19  ;;  %v290_v19 = vsub.f32 %v2677_v12, %v289_v40 }
  0x28   :  { %2116 = vmatprep.subr.bf16.mxu0 %v3184_v3  ;;  %2137 = vmatprep.subr.bf16.mxu1 %v3184_v3 }
  0x29   :  { %v2141_v28 = vpack.c.bf16 %v277_v47, %v270_v46  ;;  %v291_v36 = vand.u32 4294901760, %v290_v19  ;;  %v297_v46 = vsub.f32 %v2696_v62, %v296_v23 }
  0x2f   :  { %2118 = vmatpush3.bf16.xpose.msra.mxu0 %v2673_v61  ;;  %2139 = vmatpush3.bf16.xpose.msra.mxu1 %v2138_v18  ;;  %v283_v18 = vsub.f32 %v2675_v63, %v282_v38  ;;  %v2717_v38 = vpack.c.bf16 %v150_v37, %v147_v25  ;;  %v298_v25 = vand.u32 4294901760, %v297_v46 }
  0x30   :  { %2119 = vmatprep.subr.bf16.mxu0 %v3184_v3  ;;  %2140 = vmatprep.subr.bf16.mxu1 %v3184_v3  ;;  %v303_v3 = vand.u32 4294901760, %v2698_v21 }
  0x31   :  { %v284_v17 = vand.u32 4294901760, %v283_v18  ;;  %v188_v18 = vsub.f32 %v2707_v35, %v3186_v60 }
  0x32   :  { %v2714_v54 = vpack.c.bf16 %v303_v3, %v296_v23  ;;  %v304_v47 = vsub.f32 %v2698_v21, %v303_v3 }
  0x33   :  { %v2144_v40 = vpack.c.bf16 %v291_v36, %v284_v17  ;;  %v189_v3 = vand.u32 4294901760, %v188_v18  ;;  %v2153_v18 = vpack.c.bf16 %v2509_v24, %v2504_v20 }
  0x34   :  { %v305_v37 = vand.u32 4294901760, %v304_v47  ;;  %v36_v47 = vmul.f32 %v2466_v2, %v2466_v2 }
  0x36   :  { %v2147_v23 = vpack.c.bf16 %v305_v37, %v298_v25  ;;  %v755_v25 = vsel %vm52_vm0, %v36_v47, 0 }
  0x37   :  { %2121 = vmatpush3.bf16.xpose.msra.mxu0 %v2702_v34  ;;  %2142 = vmatpush3.bf16.xpose.msra.mxu1 %v2141_v28  ;;  %v34_v28 = vmul.f32 %v2456_v0, %v2456_v0  ;;  %v752_v0 = vsel %vm52_vm0, %v35_v51, 0 }
  0x38   :  { %2122 = vmatprep.subr.bf16.mxu0 %v3201_v52  ;;  %2143 = vmatprep.subr.bf16.mxu1 %v3201_v52  ;;  %v800_v36 = vand.u32 4294901760, %v752_v0 }
  0x39   :  { %v749_v19 = vsel %vm52_vm0, %v34_v28, 0  ;;  %v37_v28 = vmul.f32 %v2477_v6, %v2477_v6 }
  0x3a   :  { %v797_v17 = vand.u32 4294901760, %v749_v19  ;;  %v2739_v46 = vsub.f32 %v752_v0, %v800_v36 }
  0x3b   :  { %v758_v37 = vsel %vm52_vm0, %v37_v28, 0 }
  0x3c   :  { %v2735_v60 = vpack.c.bf16 %v800_v36, %v797_v17  ;;  %v3187_v14 = vand.u32 4294901760, %v2739_v46 }
  0x3e   :  { %v898_v6 = vsub.f32 %v2739_v46, %v3187_v14 }
  0x3f   :  { %2124 = vmatpush3.bf16.xpose.msra.mxu0 %v2717_v38  ;;  %2145 = vmatpush3.bf16.xpose.msra.mxu1 %v2144_v40  ;;  %v2737_v40 = vsub.f32 %v749_v19, %v797_v17  ;;  %v806_v19 = vand.u32 4294901760, %v758_v37  ;;  %v39_v17 = vmul.f32 %v2487_v10, %v2487_v10 }
  0x40   :  { %2146 = vmatprep.subr.bf16.mxu1 %v3201_v52  ;;  %2149 = vmatprep.subr.bf16.mxu0 %v3201_v52 }
  0x41   :  { %v3188_v51 = vand.u32 4294901760, %v2737_v40  ;;  %v764_v47 = vsel %vm52_vm0, %v39_v17, 0 }
  0x43   :  { %v891_v2 = vsub.f32 %v2737_v40, %v3188_v51  ;;  %v2769_v51 = vsub.f32 %v758_v37, %v806_v19 }
  0x45   :  { %v892_v0 = vand.u32 4294901760, %v891_v2  ;;  %v812_v2 = vand.u32 4294901760, %v764_v47 }
  0x46   :  { %1714 = vmatmul.mubr.f32.vlgmr.msra.gmra.mrb[0].mxu0 %v189_v3  ;;  %v803_v3 = vand.u32 4294901760, %v755_v25 }
  0x47   :  { %2148 = vmatpush3.bf16.xpose.msra.mxu1 %v2147_v23  ;;  %2151 = vmatpush3.bf16.xpose.msra.mxu0 %v2150_v1  ;;  %v899_v23 = vand.u32 4294901760, %v898_v6  ;;  %v38_v1 = vmul.f32 %v2482_v9, %v2482_v9  ;;  %v3191_v9 = vand.u32 4294901760, %v2769_v51  ;;  %v2799_v17 = vsub.f32 %v764_v47, %v812_v2 }
  0x48   :  { %2152 = vmatprep.subr.bf16.mxu0 %v3201_v52  ;;  %2173 = vmatprep.subr.bf16.mxu1 %v3201_v52  ;;  %v2765_v36 = vpack.c.bf16 %v806_v19, %v803_v3  ;;  %v2767_v14 = vsub.f32 %v755_v25, %v803_v3  ;;  %v2156_v25 = vpack.c.bf16 %v2532_v33, %v2530_v32 }
  0x49   :  { %1783 = vmatprep.mubr.msk.f32.mxu0 %vm2424_vm1, %v3202_v15  ;;  %v2771_v20 = vpack.c.bf16 %v899_v23, %v892_v0  ;;  %v761_v10 = vsel %vm52_vm0, %v38_v1, 0  ;;  %v40_v0 = vmul.f32 %v2514_v26, %v2514_v26  ;;  %v41_v23 = vmul.f32 %v2526_v30, %v2526_v30 }
  0x4a   :  { %v3189_v24 = vand.u32 4294901760, %v2767_v14  ;;  %v809_v28 = vand.u32 4294901760, %v761_v10  ;;  %v3193_v33 = vand.u32 4294901760, %v2799_v17 }
  0x4b   :  { %v767_v26 = vsel %vm52_vm0, %v40_v0, 0  ;;  %v770_v30 = vsel %vm52_vm0, %v41_v23, 0  ;;  %v43_v0 = vmul.f32 %v2558_v49, %v2558_v49 }
  0x4c   :  { %v905_v6 = vsub.f32 %v2767_v14, %v3189_v24  ;;  %v2791_v37 = vpack.c.bf16 %v812_v2, %v809_v28  ;;  %v2797_v1 = vsub.f32 %v761_v10, %v809_v28  ;;  %v815_v10 = vand.u32 4294901760, %v767_v26 }
  0x4d   :  { %v818_v47 = vand.u32 4294901760, %v770_v30  ;;  %v926_v2 = vsub.f32 %v2799_v17, %v3193_v33  ;;  %v776_v49 = vsel %vm52_vm0, %v43_v0, 0 }
  0x4e   :  { %1749 = vmatmul.mubr.f32.vlgmr.msra.gmra.mrb[0].mxu1 %v2700_v29  ;;  %v906_v3 = vand.u32 4294901760, %v905_v6  ;;  %v3190_v32 = vand.u32 4294901760, %v2797_v1  ;;  %v2159_v6 = vpack.c.bf16 %v2570_v55, %v2560_v50  ;;  %v2824_v23 = vsub.f32 %v767_v26, %v815_v10 }
  0x4f   :  { %2154 = vmatpush3.bf16.xpose.msra.mxu0 %v2153_v18  ;;  %2175 = vmatpush3.bf16.xpose.msra.mxu1 %v2493_v13  ;;  %v912_v18 = vsub.f32 %v2769_v51, %v3191_v9 }
  0x50   :  { %2155 = vmatprep.subr.bf16.mxu0 %v3201_v52  ;;  %2176 = vmatprep.subr.bf16.mxu1 %v3201_v52  ;;  %v919_v28 = vsub.f32 %v2797_v1, %v3190_v32  ;;  %v2826_v32 = vsub.f32 %v770_v30, %v818_v47  ;;  %v3192_v50 = vand.u32 4294901760, %v2824_v23  ;;  %v824_v30 = vand.u32 4294901760, %v776_v49 }
  0x51   :  { %1818 = vmatprep.mubr.msk.f32.mxu1 %vm2424_vm1, %v3202_v15  ;;  %v913_v19 = vand.u32 4294901760, %v912_v18  ;;  %v2818_v18 = vpack.c.bf16 %v818_v47, %v815_v10 }
  0x52   :  { %v3195_v55 = vand.u32 4294901760, %v2826_v32  ;;  %v933_v10 = vsub.f32 %v2824_v23, %v3192_v50  ;;  %v2853_v50 = vsub.f32 %v776_v49, %v824_v30 }
  0x53   :  { %v2801_v24 = vpack.c.bf16 %v913_v19, %v906_v3  ;;  %v927_v3 = vand.u32 4294901760, %v926_v2  ;;  %v42_v19 = vmul.f32 %v2553_v48, %v2553_v48 }
  0x54   :  { %v940_v47 = vsub.f32 %v2826_v32, %v3195_v55 }
  0x55   :  { %v773_v48 = vsel %vm52_vm0, %v42_v19, 0  ;;  %v45_v19 = vmul.f32 %v2589_v5, %v2589_v5 }
  0x56   :  { %v821_v26 = vand.u32 4294901760, %v773_v48 }
  0x57   :  { %2157 = vmatpush3.bf16.xpose.msra.mxu0 %v2156_v25  ;;  %2178 = vmatpush3.bf16.xpose.msra.mxu1 %v2528_v31  ;;  %v920_v25 = vand.u32 4294901760, %v919_v28  ;;  %v2162_v28 = vpack.c.bf16 %v2596_v16, %v2593_v11  ;;  %v3197_v16 = vand.u32 4294901760, %v2853_v50  ;;  %v782_v5 = vsel %vm52_vm0, %v45_v19, 0 }
  0x58   :  { %2158 = vmatprep.subr.bf16.mxu0 %v3201_v52  ;;  %2179 = vmatprep.subr.bf16.mxu1 %v3201_v52  ;;  %v2845_v2 = vpack.c.bf16 %v824_v30, %v821_v26  ;;  %v2851_v0 = vsub.f32 %v773_v48, %v821_v26  ;;  %v830_v49 = vand.u32 4294901760, %v782_v5 }
  0x59   :  { %v2828_v9 = vpack.c.bf16 %v927_v3, %v920_v25  ;;  %v941_v25 = vand.u32 4294901760, %v940_v47  ;;  %v44_v3 = vmul.f32 %v2584_v4, %v2584_v4  ;;  %v954_v30 = vsub.f32 %v2853_v50, %v3197_v16 }
  0x5a   :  { %v3194_v11 = vand.u32 4294901760, %v2851_v0 }
  0x5b   :  { %v779_v4 = vsel %vm52_vm0, %v44_v3, 0  ;;  %v47_v3 = vmul.f32 %v2620_v39, %v2620_v39 }
  0x5c   :  { %v827_v48 = vand.u32 4294901760, %v779_v4  ;;  %v947_v26 = vsub.f32 %v2851_v0, %v3194_v11  ;;  %v2880_v11 = vsub.f32 %v782_v5, %v830_v49 }
  0x5d   :  { %v788_v39 = vsel %vm52_vm0, %v47_v3, 0 }
  0x5e   :  { %v2872_v47 = vpack.c.bf16 %v830_v49, %v827_v48  ;;  %v2878_v19 = vsub.f32 %v779_v4, %v827_v48  ;;  %v836_v5 = vand.u32 4294901760, %v788_v39 }
  0x5f   :  { %2160 = vmatpush3.bf16.xpose.msra.mxu0 %v2159_v6  ;;  %2181 = vmatpush3.bf16.xpose.msra.mxu1 %v2568_v53  ;;  %v934_v6 = vand.u32 4294901760, %v933_v10  ;;  %v2165_v10 = vpack.c.bf16 %v2628_v45, %v2626_v42  ;;  %v967_v45 = vand.u32 4294901760, %v2880_v11 }
  0x60   :  { %2161 = vmatprep.subr.bf16.mxu0 %v3201_v52  ;;  %2182 = vmatprep.subr.bf16.mxu1 %v3201_v52  ;;  %v3196_v42 = vand.u32 4294901760, %v2878_v19 }
  0x61   :  { %v2855_v33 = vpack.c.bf16 %v941_v25, %v934_v6  ;;  %v955_v6 = vand.u32 4294901760, %v954_v30  ;;  %v46_v25 = vmul.f32 %v2606_v27, %v2606_v27  ;;  %v968_v49 = vsub.f32 %v2880_v11, %v967_v45 }
  0x62   :  { %v961_v48 = vsub.f32 %v2878_v19, %v3196_v42  ;;  %v2907_v42 = vsub.f32 %v788_v39, %v836_v5 }
  0x63   :  { %v785_v27 = vsel %vm52_vm0, %v46_v25, 0  ;;  %v49_v25 = vmul.f32 %v2669_v43, %v2669_v43 }
  0x64   :  { %v833_v4 = vand.u32 4294901760, %v785_v27 }
  0x65   :  { %v794_v43 = vsel %vm52_vm0, %v49_v25, 0 }
  0x66   :  { %v2899_v30 = vpack.c.bf16 %v836_v5, %v833_v4  ;;  %v2905_v3 = vsub.f32 %v785_v27, %v833_v4  ;;  %v842_v39 = vand.u32 4294901760, %v794_v43 }
  0x67   :  { %2163 = vmatpush3.bf16.xpose.msra.mxu0 %v2162_v28  ;;  %2184 = vmatpush3.bf16.xpose.msra.mxu1 %v2591_v7  ;;  %v948_v28 = vand.u32 4294901760, %v947_v26  ;;  %v2168_v26 = vpack.c.bf16 %v2677_v12, %v2675_v63  ;;  %v3199_v12 = vand.u32 4294901760, %v2907_v42 }
  0x68   :  { %2164 = vmatprep.subr.bf16.mxu0 %v3201_v52  ;;  %2185 = vmatprep.subr.bf16.mxu1 %v3201_v52  ;;  %v3198_v63 = vand.u32 4294901760, %v2905_v3 }
  0x69   :  { %v2882_v55 = vpack.c.bf16 %v955_v6, %v948_v28  ;;  %v969_v28 = vand.u32 4294901760, %v968_v49  ;;  %v48_v6 = vmul.f32 %v2662_v8, %v2662_v8  ;;  %v982_v5 = vsub.f32 %v2907_v42, %v3199_v12 }
  0x6a   :  { %v975_v4 = vsub.f32 %v2905_v3, %v3198_v63 }
  0x6b   :  { %v791_v8 = vsel %vm52_vm0, %v48_v6, 0  ;;  %v2930_v6 = vsub.f32 %v794_v43, %v842_v39 }
  0x6c   :  { %v839_v27 = vand.u32 4294901760, %v791_v8 }
  0x6d   :  { %v995_v12 = vand.u32 4294901760, %v2930_v6 }
  0x6e   :  { %v2926_v49 = vpack.c.bf16 %v842_v39, %v839_v27  ;;  %v2294_v39 = vpack.c.bf16 %v2739_v46, %v2737_v40 }
  0x6f   :  { %2166 = vmatpush3.bf16.xpose.msra.mxu0 %v2165_v10  ;;  %2187 = vmatpush3.bf16.xpose.msra.mxu1 %v2624_v41  ;;  %v962_v10 = vand.u32 4294901760, %v961_v48  ;;  %v2171_v48 = vpack.c.bf16 %v2698_v21, %v2696_v62  ;;  %v996_v21 = vsub.f32 %v2930_v6, %v995_v12 }
  0x70   :  { %2167 = vmatprep.subr.bf16.mxu0 %v3201_v52  ;;  %2188 = vmatprep.subr.bf16.mxu1 %v3201_v52 }
  0x71   :  { %v2909_v16 = vpack.c.bf16 %v969_v28, %v962_v10  ;;  %v983_v10 = vand.u32 4294901760, %v982_v5  ;;  %v2928_v28 = vsub.f32 %v791_v8, %v839_v27  ;;  %v997_v43 = vand.u32 4294901760, %v996_v21  ;;  %v1437_v21 = vld [vmem:[%s3180_s3] sm:$0xff]  ;;  %s2427_s3 = smov [#allocation2]  }
  0x72   :  { %v3203_v5 = vand.u32 4294901760, %v2707_v35  ;;  %s1469_s24 = sshll.u32 %s2427_s3, 4  ;;  %s1470_s24 = int_to_ptr.vmem [resolvable:$true] %s1469_s24 }
  0x73   :  { %v988_v63 = vand.u32 4294901760, %v2928_v28  ;;  %s2399_s25 = scalar_lea.vmem %s1470_s24, 16  ;;  %s2403_s26 = scalar_lea.vmem %s1470_s24, 32 }
  0x74   :  { %p2400_p0 = scmp.ne.s32.totalorder %s1470_s24, %s2399_s25  ;;  %p2404_p1 = scmp.lt.s32.totalorder %s1470_s24, %s1470_s24 }
  0x75   :  { %v989_v62 = vsub.f32 %v2928_v28, %v988_v63  ;;  %p2405_p2 = scmp.lt.s32.totalorder %s2403_s26, %s2399_s25 }
  0x77   :  { %2169 = vmatpush3.bf16.xpose.msra.mxu0 %v2168_v26  ;;  %2190 = vmatpush3.bf16.xpose.msra.mxu1 %v2673_v61  ;;  %v976_v26 = vand.u32 4294901760, %v975_v4  ;;  %v990_v8 = vand.u32 4294901760, %v989_v62  ;;  %v2297_v4 = vpack.c.bf16 %v2769_v51, %v2767_v14  ;;  %v3212_v62 = vand.u32 4294901760, %v2826_v32  ;;  %p2406_p3 = por %p2405_p2, %p2404_p1 }
  0x78   :  { %2170 = vmatprep.subr.bf16.mxu0 %v3201_v52  ;;  %2191 = vmatprep.subr.bf16.mxu1 %v3201_v52 }
  0x79   :  { %v2932_v25 = vpack.c.bf16 %v983_v10, %v976_v26  ;;  %v2945_v27 = vpack.c.bf16 %v997_v43, %v990_v8  ;;  %v3213_v8 = vand.u32 4294901760, %v2851_v0  ;;  %v2426_v43 = vmov 0   ;;  %p2407_p4 = pnand %p2406_p3, %p2400_p0 }
  0x7a   :  { %2394 = vset.pattern.permute.xlu0 %v2426_v43 }
  0x7b   :  { %1440 = vperm.xlu0 %2394, %v1437_v21  }
  0x7f   :  { %2172 = vmatpush3.bf16.xpose.msra.mxu0 %v2171_v48  ;;  %2193 = vmatpush3.bf16.xpose.msra.mxu1 %v2702_v34  ;;  %v3208_v48 = vand.u32 4294901760, %v2769_v51 }
  0x80   :  { %2194 = vmatprep.subr.bf16.mxu1 %v3201_v52  ;;  %2197 = vmatprep.subr.bf16.mxu0 %v3201_v52 }
  0x86   :  { %1784 = vmatmul.mubr.f32.vlgmr.msra.gmra.mrb[2].mxu0 %v2707_v35 }
  0x87   :  { %2196 = vmatpush3.bf16.xpose.msra.mxu1 %v2717_v38  ;;  %2199 = vmatpush3.bf16.xpose.msra.mxu0 %v2638_v56  ;;  %v2300_v56 = vpack.c.bf16 %v2799_v17, %v2797_v1 }
  0x88   :  { %2200 = vmatprep.subr.bf16.mxu0 %v3201_v52  ;;  %2221 = vmatprep.subr.bf16.mxu1 %v3201_v52 }
  0x89   :  { %1853 = vmatprep.mubr.msk.f32.mxu0 %vm2424_vm1, %v3202_v15 }
  0x8e   :  { %1819 = vmatmul.mubr.f32.vlgmr.msra.gmra.mrb[2].mxu1 %v3203_v5 }
  0x8f   :  { %2202 = vmatpush3.bf16.xpose.msra.mxu0 %v2644_v57  ;;  %2223 = vmatpush3.bf16.xpose.msra.mxu1 %v2493_v13  ;;  %v2303_v13 = vpack.c.bf16 %v2826_v32, %v2824_v23  ;;  %v2306_v57 = vpack.c.bf16 %v2853_v50, %v2851_v0 }
  0x90   :  { %2203 = vmatprep.subr.bf16.mxu0 %v3201_v52  ;;  %2224 = vmatprep.subr.bf16.mxu1 %v3201_v52 }
  0x91   :  { %1888 = vmatprep.mubr.msk.f32.mxu1 %vm2424_vm1, %v3202_v15 }
  0x97   :  { %2205 = vmatpush3.bf16.xpose.msra.mxu0 %v2650_v58  ;;  %2226 = vmatpush3.bf16.xpose.msra.mxu1 %v2528_v31  ;;  %v2309_v31 = vpack.c.bf16 %v2880_v11, %v2878_v19  ;;  %v3204_v58 = vld [vmem:[#allocation5_spill] sm:$0xff] }
  0x98   :  { %2206 = vmatprep.subr.bf16.mxu0 %v3201_v52  ;;  %2227 = vmatprep.subr.bf16.mxu1 %v3201_v52 }
  0x9f   :  { %2208 = vmatpush3.bf16.xpose.msra.mxu0 %v2652_v59  ;;  %2229 = vmatpush3.bf16.xpose.msra.mxu1 %v2568_v53  ;;  %v2312_v53 = vpack.c.bf16 %v2907_v42, %v2905_v3 }
  0xa0   :  { %2209 = vmatprep.subr.bf16.mxu0 %v3201_v52  ;;  %2230 = vmatprep.subr.bf16.mxu1 %v3201_v52 }
  0xa7   :  { %2211 = vmatpush3.bf16.xpose.msra.mxu0 %v2656_v22  ;;  %2232 = vmatpush3.bf16.xpose.msra.mxu1 %v2591_v7  ;;  %v2315_v7 = vpack.c.bf16 %v2930_v6, %v2928_v28 }
  0xa8   :  { %2212 = vmatprep.subr.bf16.mxu0 %v3201_v52  ;;  %2233 = vmatprep.subr.bf16.mxu1 %v3201_v52 }
  0xaf   :  { %2214 = vmatpush3.bf16.xpose.msra.mxu0 %v2671_v44  ;;  %2235 = vmatpush3.bf16.xpose.msra.mxu1 %v2624_v41  ;;  %v50_v41 = vld [vmem:[%s3178_s1] sm:$0xff] }
  0xb0   :  { %2215 = vmatprep.subr.bf16.mxu0 %v3201_v52  ;;  %2236 = vmatprep.subr.bf16.mxu1 %v3201_v52  ;;  %v746_v59 = vsel %vm52_vm0, %v50_v41, 0 }
  0xb1   :  { %v3036_v22 = vand.u32 4294901760, %v746_v59 }
  0xb3   :  { %v878_v44 = vsub.f32 %v746_v59, %v3036_v22 }
  0xb7   :  { %2217 = vmatpush3.bf16.xpose.msra.mxu0 %v3204_v58  ;;  %2238 = vmatpush3.bf16.xpose.msra.mxu1 %v2673_v61  ;;  %v879_v61 = vand.u32 4294901760, %v878_v44 }
  0xb8   :  { %2218 = vmatprep.subr.bf16.mxu0 %v3201_v52  ;;  %2239 = vmatprep.subr.bf16.mxu1 %v3201_v52 }
  0xbf   :  { %2220 = vmatpush3.bf16.xpose.msra.mxu0 %v2714_v54  ;;  %2241 = vmatpush3.bf16.xpose.msra.mxu1 %v2702_v34 }
  0xc0   :  { %2242 = vmatprep.subr.bf16.mxu1 %v3201_v52  ;;  %2245 = vmatprep.subr.bf16.mxu0 %v3201_v52 }
  0xc6   :  { %1854 = vmatmul.mubr.f32.vlgmr.msra.gmra.mrb[4].mxu0 %v2700_v29 }
  0xc7   :  { %2244 = vmatpush3.bf16.xpose.msra.mxu1 %v2717_v38  ;;  %2247 = vmatpush3.bf16.xpose.msra.mxu0 %v2735_v60 }
  0xc8   :  { %2248 = vmatprep.subr.bf16.mxu0 %v3201_v52  ;;  %2269 = vmatprep.subr.bf16.mxu1 %v3201_v52 }
  0xc9   :  { %1923 = vmatprep.mubr.msk.f32.mxu0 %vm2424_vm1, %v3202_v15 }
  0xce   :  { %1889 = vmatmul.mubr.f32.vlgmr.msra.gmra.mrb[4].mxu1 %v2700_v29  ;;  %v880_v29 = vsub.f32 %v878_v44, %v879_v61 }
  0xcf   :  { %2250 = vmatpush3.bf16.xpose.msra.mxu0 %v2765_v36  ;;  %2271 = vmatpush3.bf16.xpose.msra.mxu1 %v2771_v20 }
  0xd0   :  { %2251 = vmatprep.subr.bf16.mxu0 %v3201_v52  ;;  %2272 = vmatprep.subr.bf16.mxu1 %v3201_v52  ;;  %v881_v34 = vand.u32 4294901760, %v880_v29 }
  0xd1   :  { %1958 = vmatprep.mubr.msk.f32.mxu1 %vm2424_vm1, %v3202_v15 }
  0xd7   :  { %2253 = vmatpush3.bf16.xpose.msra.mxu0 %v2791_v37  ;;  %2274 = vmatpush3.bf16.xpose.msra.mxu1 %v2801_v24 }
  0xd8   :  { %2254 = vmatprep.subr.bf16.mxu0 %v3201_v52  ;;  %2275 = vmatprep.subr.bf16.mxu1 %v3201_v52 }
  0xdf   :  { %2256 = vmatpush3.bf16.xpose.msra.mxu0 %v2818_v18  ;;  %2277 = vmatpush3.bf16.xpose.msra.mxu1 %v2828_v9  ;;  %v3205_v9 = vand.u32 4294901760, %v2737_v40  ;;  %v3209_v40 = vand.u32 4294901760, %v2797_v1 }
  0xe0   :  { %2257 = vmatprep.subr.bf16.mxu0 %v3201_v52  ;;  %2278 = vmatprep.subr.bf16.mxu1 %v3201_v52 }
  0xe7   :  { %2259 = vmatpush3.bf16.xpose.msra.mxu0 %v2845_v2  ;;  %2280 = vmatpush3.bf16.xpose.msra.mxu1 %v2855_v33  ;;  %v3206_v33 = vand.u32 4294901760, %v2739_v46  ;;  %v3210_v46 = vand.u32 4294901760, %v2799_v17 }
  0xe8   :  { %2260 = vmatprep.subr.bf16.mxu0 %v3201_v52  ;;  %2281 = vmatprep.subr.bf16.mxu1 %v3201_v52 }
  0xe9   :  { %v2348_v10 = vpack.c.bf16 %v3210_v46, %v3209_v40 }
  0xef   :  { %2262 = vmatpush3.bf16.xpose.msra.mxu0 %v2872_v47  ;;  %2283 = vmatpush3.bf16.xpose.msra.mxu1 %v2882_v55  ;;  %v2342_v55 = vpack.c.bf16 %v3206_v33, %v3205_v9 }
  0xf0   :  { %2263 = vmatprep.subr.bf16.mxu0 %v3201_v52  ;;  %2284 = vmatprep.subr.bf16.mxu1 %v3201_v52 }
  0xf7   :  { %2265 = vmatpush3.bf16.xpose.msra.mxu0 %v2899_v30  ;;  %2286 = vmatpush3.bf16.xpose.msra.mxu1 %v2909_v16  ;;  %v3207_v16 = vand.u32 4294901760, %v2767_v14 }
  0xf8   :  { %2266 = vmatprep.subr.bf16.mxu0 %v3201_v52  ;;  %2287 = vmatprep.subr.bf16.mxu1 %v3201_v52 }
  0xf9   :  { %v2345_v26 = vpack.c.bf16 %v3208_v48, %v3207_v16 }
  0xff   :  { %2268 = vmatpush3.bf16.xpose.msra.mxu0 %v2926_v49  ;;  %2289 = vmatpush3.bf16.xpose.msra.mxu1 %v2932_v25  ;;  %v3211_v25 = vand.u32 4294901760, %v2824_v23  ;;  %v3214_v23 = vand.u32 4294901760, %v2853_v50  ;;  %v3216_v50 = vand.u32 4294901760, %v2905_v3 }
 0x100   :  { %2290 = vmatprep.subr.bf16.mxu1 %v3201_v52  ;;  %2293 = vmatprep.subr.bf16.mxu0 %v3201_v52 }
 0x101   :  { %v2354_v32 = vpack.c.bf16 %v3214_v23, %v3213_v8 }
 0x106   :  { %1924 = vmatmul.mubr.f32.vlgmr.msra.gmra.mrb[6].mxu0 %v881_v34 }
 0x107   :  { %2292 = vmatpush3.bf16.xpose.msra.mxu1 %v2945_v27  ;;  %2295 = vmatpush3.bf16.xpose.msra.mxu0 %v2294_v39 }
 0x108   :  { %2296 = vmatprep.subr.bf16.mxu0 %v3201_v52  ;;  %2317 = vmatprep.subr.bf16.mxu1 %v3201_v52 }
 0x109   :  { %1993 = vmatprep.mubr.msk.f32.mxu0 %vm2424_vm1, %v3202_v15 }
 0x10e   :  { %1959 = vmatmul.mubr.f32.vlgmr.msra.gmra.mrb[6].mxu1 %v3036_v22 }
 0x10f   :  { %2298 = vmatpush3.bf16.xpose.msra.mxu0 %v2297_v4  ;;  %2319 = vmatpush3.bf16.xpose.msra.mxu1 %v2735_v60 }
 0x110   :  { %2299 = vmatprep.subr.bf16.mxu0 %v3201_v52  ;;  %2320 = vmatprep.subr.bf16.mxu1 %v3201_v52 }
 0x111   :  { %2028 = vmatprep.mubr.msk.f32.mxu1 %vm2424_vm1, %v3202_v15 }
 0x117   :  { %2301 = vmatpush3.bf16.xpose.msra.mxu0 %v2300_v56  ;;  %2322 = vmatpush3.bf16.xpose.msra.mxu1 %v2765_v36 }
 0x118   :  { %2302 = vmatprep.subr.bf16.mxu0 %v3201_v52  ;;  %2323 = vmatprep.subr.bf16.mxu1 %v3201_v52 }
 0x119   :  { %v191_v35 = vpop.f32.mrb[0].mxu0 }
 0x11a   :  { %v1715_v54 = vpop.f32.mrb[1].mxu0 }
 0x11f   :  { %2304 = vmatpush3.bf16.xpose.msra.mxu0 %v2303_v13  ;;  %2325 = vmatpush3.bf16.xpose.msra.mxu1 %v2791_v37 }
 0x120   :  { %2305 = vmatprep.subr.bf16.mxu0 %v3201_v52  ;;  %2326 = vmatprep.subr.bf16.mxu1 %v3201_v52 }
 0x121   :  { %v342_v38 = vpop.f32.mrb[0].mxu1 }
 0x122   :  { %v343_v20 = vadd.f32 %v342_v38, %v191_v35  ;;  %v1750_v24 = vpop.f32.mrb[1].mxu1 }
 0x127   :  { %2307 = vmatpush3.bf16.xpose.msra.mxu0 %v2306_v57  ;;  %2328 = vmatpush3.bf16.xpose.msra.mxu1 %v2818_v18 }
 0x128   :  { %2308 = vmatprep.subr.bf16.mxu0 %v3201_v52  ;;  %2329 = vmatprep.subr.bf16.mxu1 %v3201_v52 }
 0x12f   :  { %2310 = vmatpush3.bf16.xpose.msra.mxu0 %v2309_v31  ;;  %2331 = vmatpush3.bf16.xpose.msra.mxu1 %v2845_v2 }
 0x130   :  { %2311 = vmatprep.subr.bf16.mxu0 %v3201_v52  ;;  %2332 = vmatprep.subr.bf16.mxu1 %v3201_v52 }
 0x137   :  { %2313 = vmatpush3.bf16.xpose.msra.mxu0 %v2312_v53  ;;  %2334 = vmatpush3.bf16.xpose.msra.mxu1 %v2872_v47 }
 0x138   :  { %2314 = vmatprep.subr.bf16.mxu0 %v3201_v52  ;;  %2335 = vmatprep.subr.bf16.mxu1 %v3201_v52 }
 0x13f   :  { %2316 = vmatpush3.bf16.xpose.msra.mxu0 %v2315_v7  ;;  %2337 = vmatpush3.bf16.xpose.msra.mxu1 %v2899_v30  ;;  %v1441_v7 = vpop.permute.xlu0 %1440 }
 0x140   :  { %2338 = vmatprep.subr.bf16.mxu1 %v3201_v52  ;;  %2341 = vmatprep.subr.bf16.mxu0 %v3201_v52 }
 0x146   :  { %1994 = vmatmul.mubr.f32.vlgmr.msra.gmra.mrb[8].mxu0 %v878_v44 }
 0x147   :  { %2340 = vmatpush3.bf16.xpose.msra.mxu1 %v2926_v49  ;;  %2343 = vmatpush3.bf16.xpose.msra.mxu0 %v2342_v55 }
 0x148   :  { %2344 = vmatprep.subr.bf16.mxu0 %v3201_v52  ;;  %2365 = vmatprep.subr.bf16.mxu1 %v3201_v52 }
 0x149   :  { %2063 = vmatprep.mubr.msk.f32.mxu0 %vm2424_vm1, %v3202_v15 }
 0x14e   :  { %2029 = vmatmul.mubr.f32.vlgmr.msra.gmra.mrb[8].mxu1 %v879_v61 }
 0x14f   :  { %2346 = vmatpush3.bf16.xpose.msra.mxu0 %v2345_v26  ;;  %2367 = vmatpush3.bf16.xpose.msra.mxu1 %v2735_v60 }
 0x150   :  { %2347 = vmatprep.subr.bf16.mxu0 %v3201_v52  ;;  %2368 = vmatprep.subr.bf16.mxu1 %v3201_v52 }
 0x151   :  { %2098 = vmatprep.mubr.msk.f32.mxu1 %vm2424_vm1, %v3202_v15  ;;  %v2351_v15 = vpack.c.bf16 %v3212_v62, %v3211_v25 }
 0x157   :  { %2349 = vmatpush3.bf16.xpose.msra.mxu0 %v2348_v10  ;;  %2370 = vmatpush3.bf16.xpose.msra.mxu1 %v2765_v36 }
 0x158   :  { %2350 = vmatprep.subr.bf16.mxu0 %v3201_v52  ;;  %2371 = vmatprep.subr.bf16.mxu1 %v3201_v52 }
 0x159   :  { %v446_v60 = vpop.f32.mrb[2].mxu0 }
 0x15a   :  { %v447_v51 = vadd.f32 %v446_v60, %v343_v20  ;;  %v1785_v14 = vpop.f32.mrb[3].mxu0 }
 0x15f   :  { %2352 = vmatpush3.bf16.xpose.msra.mxu0 %v2351_v15  ;;  %2373 = vmatpush3.bf16.xpose.msra.mxu1 %v2791_v37  ;;  %v3215_v37 = vand.u32 4294901760, %v2878_v19 }
 0x160   :  { %2353 = vmatprep.subr.bf16.mxu0 %v3201_v52  ;;  %2374 = vmatprep.subr.bf16.mxu1 %v3201_v52 }
 0x161   :  { %v535_v36 = vpop.f32.mrb[2].mxu1  ;;  %v2357_v27 = vpack.c.bf16 %v967_v45, %v3215_v37 }
 0x162   :  { %v536_v1 = vadd.f32 %v535_v36, %v447_v51  ;;  %v1820_v17 = vpop.f32.mrb[3].mxu1 }
 0x167   :  { %2355 = vmatpush3.bf16.xpose.msra.mxu0 %v2354_v32  ;;  %2376 = vmatpush3.bf16.xpose.msra.mxu1 %v2818_v18  ;;  %v3217_v18 = vand.u32 4294901760, %v2907_v42 }
 0x168   :  { %2356 = vmatprep.subr.bf16.mxu0 %v3201_v52  ;;  %2377 = vmatprep.subr.bf16.mxu1 %v3201_v52 }
 0x169   :  { %v2360_v0 = vpack.c.bf16 %v3217_v18, %v3216_v50 }
 0x16f   :  { %2358 = vmatpush3.bf16.xpose.msra.mxu0 %v2357_v27  ;;  %2379 = vmatpush3.bf16.xpose.msra.mxu1 %v2845_v2  ;;  %v2363_v2 = vpack.c.bf16 %v995_v12, %v988_v63 }
 0x170   :  { %2359 = vmatprep.subr.bf16.mxu0 %v3201_v52  ;;  %2380 = vmatprep.subr.bf16.mxu1 %v3201_v52 }
 0x177   :  { %2361 = vmatpush3.bf16.xpose.msra.mxu0 %v2360_v0  ;;  %2382 = vmatpush3.bf16.xpose.msra.mxu1 %v2872_v47 }
 0x178   :  { %2362 = vmatprep.subr.bf16.mxu0 %v3201_v52  ;;  %2383 = vmatprep.subr.bf16.mxu1 %v3201_v52 }
 0x17f   :  { %2364 = vmatpush3.bf16.xpose.msra.mxu0 %v2363_v2  ;;  %2385 = vmatpush3.bf16.xpose.msra.mxu1 %v2899_v30 }
 0x180   :  { %2386 = vmatprep.subr.bf16.mxu1 %v3201_v52 }
 0x186   :  { %2064 = vmatmul.mubr.f32.vlgmr.msra.gmra.mrb[10].mxu0 %v3036_v22 }
 0x187   :  { %2388 = vmatpush3.bf16.xpose.msra.mxu1 %v2926_v49 }
 0x18e   :  { %2099 = vmatmul.mubr.f32.vlgmr.msra.gmra.mrb[10].mxu1 %v3036_v22 }
 0x199   :  { %v654_v11 = vpop.f32.mrb[4].mxu0 }
 0x19a   :  { %v655_v47 = vadd.f32 %v654_v11, %v536_v1  ;;  %v1855_v19 = vpop.f32.mrb[5].mxu0 }
 0x1a1   :  { %v741_v42 = vpop.f32.mrb[4].mxu1 }
 0x1a2   :  { %v742_v45 = vadd.f32 %v741_v42, %v655_v47  ;;  %v1890_v3 = vpop.f32.mrb[5].mxu1 }
 0x1d9   :  { %v883_v28 = vpop.f32.mrb[6].mxu0 }
 0x1da   :  { %v884_v6 = vadd.f32 %v883_v28, %v742_v45  ;;  %v1925_v63 = vpop.f32.mrb[7].mxu0 }
 0x1e1   :  { %v1034_v12 = vpop.f32.mrb[6].mxu1 }
 0x1e2   :  { %v1035_v39 = vadd.f32 %v1034_v12, %v884_v6  ;;  %v1960_v30 = vpop.f32.mrb[7].mxu1 }
 0x219   :  { %v1138_v4 = vpop.f32.mrb[8].mxu0 }
 0x21a   :  { %v1139_v52 = vadd.f32 %v1138_v4, %v1035_v39  ;;  %v1995_v5 = vpop.f32.mrb[9].mxu0 }
 0x221   :  { %v1227_v56 = vpop.f32.mrb[8].mxu1 }
 0x222   :  { %v1228_v13 = vadd.f32 %v1227_v56, %v1139_v52  ;;  %v2030_v49 = vpop.f32.mrb[9].mxu1 }
 0x259   :  { %v1346_v57 = vpop.f32.mrb[10].mxu0 }
 0x25a   :  { %v1347_v31 = vadd.f32 %v1346_v57, %v1228_v13  ;;  %v2065_v53 = vpop.f32.mrb[11].mxu0 }
 0x261   :  { %v1433_v58 = vpop.f32.mrb[10].mxu1 }
 0x262   :  { %v1434_v41 = vadd.f32 %v1433_v58, %v1347_v31  ;;  %v2100_v59 = vpop.f32.mrb[11].mxu1 }
 0x264   :  { %v1443_v22 = vadd.f32 %v1441_v7, %v1434_v41 }
 0x266   :  { %v1444_v44 = vrot.slane %v1443_v22, 4 }
 0x268   :  { %v1445_v61 = vmax.f32 %v1443_v22, %v1444_v44 }
 0x26a   :  { %v1446_v29 = vrot.slane %v1445_v61, 2 }
 0x26c   :  { %v1447_v34 = vmax.f32 %v1445_v61, %v1446_v29 }
 0x26e   :  { %v1448_v35 = vrot.slane %v1447_v34, 1 }
 0x270   :  { %v1449_v54 = vmax.f32 %v1447_v34, %v1448_v35 }
 0x272   :  { %v1450_v38 = vsub.f32 %v1443_v22, %v1449_v54 }
 0x274   :  { %v1451_v20 = vmul.f32 1.442695, %v1450_v38 }
 0x276   :  { %2395 = vpow2.f32 %v1451_v20 }
 0x280   :  { %v2396_v24 = vpop.eup %2395 }
 0x281   :  { %v1453_v9 = vrot.slane %v2396_v24, 4 }
 0x283   :  { %v1454_v33 = vadd.f32 %v2396_v24, %v1453_v9 }
 0x285   :  { %v1455_v55 = vrot.slane %v1454_v33, 2 }
 0x287   :  { %v1456_v16 = vadd.f32 %v1455_v55, %v1454_v33 }
 0x289   :  { %v1457_v48 = vrot.slane %v1456_v16, 1 }
 0x28b   :  { %v1458_v26 = vadd.f32 %v1457_v48, %v1456_v16 }
 0x28d   :  { %2397 = vlog2.f32 %v1458_v26 }
 0x297   :  { %v2398_v40 = vpop.eup %2397 }
 0x298   :  { %v1460_v46 = vmul.f32 0.6931472, %v2398_v40 }
 0x29a   :  { %v1461_v10 = vadd.f32 %v1460_v46, %v1449_v54 }
 0x29c   :  { %1462 = vst [vmem:[#allocation2] sm:$0x1] %v1461_v10 }
 0x29d   :  { %2410 = shalt.err (!%p2407_p4)
}
 0x29e   :  { %s2411_s29 = scalar_lea.hbm %s3181_s4, 16 }
 0x29f   :  { %p2412_p5 = scmp.ne.s32.totalorder %s3181_s4, %s2411_s29  ;;  %p2415_p6 = scmp.lt.u32.totalorder %s2411_s29, %s3181_s4 }
 0x2a1   :  { %p2417_p7 = pnand %p2415_p6, %p2412_p5 }
 0x2a3   :  { %2420 = shalt.err (!%p2417_p7)
}
 0x2a4   :  { %1472 = dma.vmem_to_hbm [thread:$0]  %s1470_s24, 16, %s3181_s4, [#allocation3]  }
 0x2a5   :  { %2421 = dma.done.wait [#allocation3], 16  }
 0x2a6   :  { %2422 = vsyncadd [#allocation3], 4294967280 }
 0x2a7   :  { %1476 = vsyncpa [#allocation3], 1 }

// kernel: tpu_custom_call.1
= control target key start
LH: loop header
LB: loop body
LE: loop exit
PB: predicated region body
PF: predicated region fallthrough
CT: control target
= control target key end

     0   :  { %vm52_vm0 = vcmask 261120   ;;  %v571_v2 = vmov 0.0|0.0   ;;  %vm572_vm2 = vmmov 0   ;;  %v573_v9 = vmov 0.0   ;;  %s726_s0 = inlined_call_operand.vmem [shape: f32[128,32], index: 0, kind: input, shape index: {}]   ;;  %s727_s1 = inlined_call_operand.vmem [shape: f32[8,32], index: 1, kind: input, shape index: {}]   ;;  %s728_s2 = inlined_call_operand.vmem [shape: f32[8,32], index: 2, kind: input, shape index: {}]   ;;  %s729_s3 = inlined_call_operand.vmem [shape: f32[8,1], index: 3, kind: input, shape index: {}]   ;;  %s730_s4 = inlined_call_operand.hbm [shape: f32[1,128], index: 4, kind: output, shape index: {}]  }
   0x1   :  { %v18_v0 = vld [vmem:[%s726_s0] sm:$0xff]  ;;  %v19_v1 = vld [vmem:[%s726_s0 + $0x8] sm:$0xff]  ;;  %473 = vmatprep.subr.bf16.mxu0 %v571_v2  ;;  %vm610_vm1 = vmpackc.low %vm52_vm0, %vm52_vm0  ;;  %505 = vmatprep.subr.bf16.mxu1 %v571_v2 }
   0x2   :  { %v474_v3 = vpack.c.bf16 %v19_v1, %v18_v0  ;;  %v34_v5 = vmul.f32 %v18_v0, %v18_v0  ;;  %v35_v6 = vmul.f32 %v19_v1, %v19_v1  ;;  %v20_v7 = vld [vmem:[%s726_s0 + $0x10] sm:$0xff]  ;;  %v21_v8 = vld [vmem:[%s726_s0 + $0x18] sm:$0xff]  ;;  %435 = vmatprep.mubr.msk.f32.mxu0 %vm572_vm2, %v573_v9 }
   0x3   :  { %v36_v11 = vmul.f32 %v20_v7, %v20_v7  ;;  %v37_v12 = vmul.f32 %v21_v8, %v21_v8 }
   0x4   :  { %476 = vmatpush3.bf16.xpose.msk.msra.mxu0 %vm610_vm1, %v474_v3  ;;  %v506_v10 = vpack.c.bf16 %v35_v6, %v34_v5 }
   0x5   :  { %477 = vmatprep.subr.bf16.mxu0 %v571_v2 }
   0x6   :  { %508 = vmatpush3.bf16.xpose.msk.msra.mxu1 %vm610_vm1, %v506_v10 }
   0x7   :  { %509 = vmatprep.subr.bf16.mxu1 %v571_v2 }
   0x8   :  { %9 = vsyncpa [#allocation3], 0  ;;  %v478_v13 = vpack.c.bf16 %v21_v8, %v20_v7  ;;  %470 = vmatprep.mubr.msk.f32.mxu1 %vm572_vm2, %v573_v9  ;;  %v295_v14 = vld [vmem:[%s729_s3] sm:$0xff]  ;;  %v510_v15 = vpack.c.bf16 %v37_v12, %v36_v11  ;;  %v574_v16 = vmov 0   ;;  %v23_v18 = vld [vmem:[%s726_s0 + $0x28] sm:$0xff] }
   0x9   :  { %542 = vset.pattern.permute.xlu0 %v574_v16  ;;  %v22_v17 = vld [vmem:[%s726_s0 + $0x20] sm:$0xff]  ;;  %v39_v20 = vmul.f32 %v23_v18, %v23_v18  ;;  %v24_v23 = vld [vmem:[%s726_s0 + $0x30] sm:$0xff]  ;;  %v25_v24 = vld [vmem:[%s726_s0 + $0x38] sm:$0xff] }
   0xa   :  { %298 = vperm.xlu0 %542, %v295_v14   ;;  %v38_v19 = vmul.f32 %v22_v17, %v22_v17  ;;  %v482_v21 = vpack.c.bf16 %v23_v18, %v22_v17  ;;  %v40_v25 = vmul.f32 %v24_v23, %v24_v23  ;;  %v41_v26 = vmul.f32 %v25_v24, %v25_v24  ;;  %v26_v29 = vld [vmem:[%s726_s0 + $0x40] sm:$0xff]  ;;  %v27_v30 = vld [vmem:[%s726_s0 + $0x48] sm:$0xff]  ;;  %v28_v35 = vld [vmem:[%s726_s0 + $0x50] sm:$0xff] }
   0xb   :  { %v486_v27 = vpack.c.bf16 %v25_v24, %v24_v23  ;;  %v42_v31 = vmul.f32 %v26_v29, %v26_v29  ;;  %v43_v32 = vmul.f32 %v27_v30, %v27_v30  ;;  %v490_v33 = vpack.c.bf16 %v27_v30, %v26_v29  ;;  %v29_v36 = vld [vmem:[%s726_s0 + $0x58] sm:$0xff]  ;;  %v30_v41 = vld [vmem:[%s726_s0 + $0x60] sm:$0xff]  ;;  %v31_v42 = vld [vmem:[%s726_s0 + $0x68] sm:$0xff] }
   0xc   :  { %480 = vmatpush3.bf16.xpose.msk.msra.mxu0 %vm610_vm1, %v478_v13  ;;  %v514_v22 = vpack.c.bf16 %v39_v20, %v38_v19  ;;  %v518_v28 = vpack.c.bf16 %v41_v26, %v40_v25  ;;  %v44_v37 = vmul.f32 %v28_v35, %v28_v35  ;;  %v45_v38 = vmul.f32 %v29_v36, %v29_v36  ;;  %v32_v47 = vld [vmem:[%s726_s0 + $0x70] sm:$0xff]  ;;  %v33_v48 = vld [vmem:[%s726_s0 + $0x78] sm:$0xff]  ;;  %v51_v53 = vld [vmem:[%s728_s2] sm:$0xff] }
   0xd   :  { %481 = vmatprep.subr.bf16.mxu0 %v571_v2  ;;  %v522_v34 = vpack.c.bf16 %v43_v32, %v42_v31  ;;  %v494_v39 = vpack.c.bf16 %v29_v36, %v28_v35  ;;  %v46_v43 = vmul.f32 %v30_v41, %v30_v41  ;;  %v47_v44 = vmul.f32 %v31_v42, %v31_v42  ;;  %v50_v54 = vld [vmem:[%s727_s1] sm:$0xff]  ;;  %s575_s1 = smov [#allocation2]  }
   0xe   :  { %512 = vmatpush3.bf16.xpose.msk.msra.mxu1 %vm610_vm1, %v510_v15  ;;  %v526_v40 = vpack.c.bf16 %v45_v38, %v44_v37  ;;  %v498_v45 = vpack.c.bf16 %v31_v42, %v30_v41  ;;  %v48_v49 = vmul.f32 %v32_v47, %v32_v47  ;;  %v49_v50 = vmul.f32 %v33_v48, %v33_v48  ;;  %s327_s2 = sshll.u32 %s575_s1, 4  ;;  %s328_s2 = int_to_ptr.vmem [resolvable:$true] %s327_s2 }
   0xf   :  { %513 = vmatprep.subr.bf16.mxu1 %v571_v2  ;;  %v530_v46 = vpack.c.bf16 %v47_v44, %v46_v43  ;;  %v502_v51 = vpack.c.bf16 %v33_v48, %v32_v47  ;;  %s547_s25 = scalar_lea.vmem %s328_s2, 16  ;;  %s551_s26 = scalar_lea.vmem %s328_s2, 32 }
  0x10   :  { %v534_v52 = vpack.c.bf16 %v49_v50, %v48_v49  ;;  %p548_p0 = scmp.ne.s32.totalorder %s328_s2, %s547_s25  ;;  %p552_p1 = scmp.lt.s32.totalorder %s328_s2, %s328_s2 }
  0x11   :  { %p553_p2 = scmp.lt.s32.totalorder %s551_s26, %s547_s25 }
  0x13   :  { %p554_p3 = por %p553_p2, %p552_p1 }
  0x14   :  { %484 = vmatpush3.bf16.xpose.msk.msra.mxu0 %vm610_vm1, %v482_v21 }
  0x15   :  { %485 = vmatprep.subr.bf16.mxu0 %v571_v2  ;;  %p555_p4 = pnand %p554_p3, %p548_p0 }
  0x16   :  { %516 = vmatpush3.bf16.xpose.msk.msra.mxu1 %vm610_vm1, %v514_v22 }
  0x17   :  { %517 = vmatprep.subr.bf16.mxu1 %v571_v2 }
  0x1c   :  { %488 = vmatpush3.bf16.xpose.msk.msra.mxu0 %vm610_vm1, %v486_v27 }
  0x1d   :  { %489 = vmatprep.subr.bf16.mxu0 %v571_v2 }
  0x1e   :  { %520 = vmatpush3.bf16.xpose.msk.msra.mxu1 %vm610_vm1, %v518_v28 }
  0x1f   :  { %521 = vmatprep.subr.bf16.mxu1 %v571_v2 }
  0x24   :  { %492 = vmatpush3.bf16.xpose.msk.msra.mxu0 %vm610_vm1, %v490_v33 }
  0x25   :  { %493 = vmatprep.subr.bf16.mxu0 %v571_v2 }
  0x26   :  { %524 = vmatpush3.bf16.xpose.msk.msra.mxu1 %vm610_vm1, %v522_v34 }
  0x27   :  { %525 = vmatprep.subr.bf16.mxu1 %v571_v2 }
  0x2c   :  { %496 = vmatpush3.bf16.xpose.msk.msra.mxu0 %vm610_vm1, %v494_v39 }
  0x2d   :  { %497 = vmatprep.subr.bf16.mxu0 %v571_v2 }
  0x2e   :  { %528 = vmatpush3.bf16.xpose.msk.msra.mxu1 %vm610_vm1, %v526_v40 }
  0x2f   :  { %529 = vmatprep.subr.bf16.mxu1 %v571_v2 }
  0x34   :  { %500 = vmatpush3.bf16.xpose.msk.msra.mxu0 %vm610_vm1, %v498_v45 }
  0x35   :  { %501 = vmatprep.subr.bf16.mxu0 %v571_v2 }
  0x36   :  { %532 = vmatpush3.bf16.xpose.msk.msra.mxu1 %vm610_vm1, %v530_v46 }
  0x37   :  { %533 = vmatprep.subr.bf16.mxu1 %v571_v2 }
  0x3c   :  { %504 = vmatpush3.bf16.xpose.msk.msra.mxu0 %vm610_vm1, %v502_v51 }
  0x3e   :  { %536 = vmatpush3.bf16.xpose.msk.msra.mxu1 %vm610_vm1, %v534_v52 }
  0x43   :  { %436 = vmatmul.mubr.msk.f32.vlgmr.msra.gmra.mrb[0].mxu0 %vm52_vm0, %v51_v53 }
  0x45   :  { %471 = vmatmul.mubr.msk.f32.vlgmr.msra.gmra.mrb[0].mxu1 %vm52_vm0, %v50_v54 }
  0x89   :  { %v299_v58 = vpop.permute.xlu0 %298 }
 0x116   :  { %v170_v55 = vpop.f32.mrb[0].mxu0 }
 0x117   :  { %v437_v56 = vpop.f32.mrb[1].mxu0 }
 0x118   :  { %v291_v57 = vpop.f32.mrb[0].mxu1 }
 0x119   :  { %v292_v59 = vadd.f32 %v291_v57, %v170_v55  ;;  %v472_v60 = vpop.f32.mrb[1].mxu1 }
 0x11b   :  { %v301_v61 = vadd.f32 %v299_v58, %v292_v59 }
 0x11d   :  { %v302_v62 = vrot.slane %v301_v61, 4 }
 0x11f   :  { %v303_v63 = vmax.f32 %v301_v61, %v302_v62 }
 0x121   :  { %v304_v0 = vrot.slane %v303_v63, 2 }
 0x123   :  { %v305_v1 = vmax.f32 %v303_v63, %v304_v0 }
 0x125   :  { %v306_v2 = vrot.slane %v305_v1, 1 }
 0x127   :  { %v307_v3 = vmax.f32 %v305_v1, %v306_v2 }
 0x129   :  { %v308_v4 = vsub.f32 %v301_v61, %v307_v3 }
 0x12b   :  { %v309_v5 = vmul.f32 1.442695, %v308_v4 }
 0x12d   :  { %543 = vpow2.f32 %v309_v5 }
 0x137   :  { %v544_v6 = vpop.eup %543 }
 0x138   :  { %v311_v7 = vrot.slane %v544_v6, 4 }
 0x13a   :  { %v312_v8 = vadd.f32 %v544_v6, %v311_v7 }
 0x13c   :  { %v313_v9 = vrot.slane %v312_v8, 2 }
 0x13e   :  { %v314_v10 = vadd.f32 %v313_v9, %v312_v8 }
 0x140   :  { %v315_v11 = vrot.slane %v314_v10, 1 }
 0x142   :  { %v316_v12 = vadd.f32 %v315_v11, %v314_v10 }
 0x144   :  { %545 = vlog2.f32 %v316_v12 }
 0x14e   :  { %v546_v13 = vpop.eup %545 }
 0x14f   :  { %v318_v14 = vmul.f32 0.6931472, %v546_v13 }
 0x151   :  { %v319_v15 = vadd.f32 %v318_v14, %v307_v3 }
 0x153   :  { %320 = vst [vmem:[#allocation2] sm:$0x1] %v319_v15 }
 0x154   :  { %558 = shalt.err (!%p555_p4)
}
 0x155   :  { %s559_s3 = scalar_lea.hbm %s730_s4, 16 }
 0x156   :  { %p560_p5 = scmp.ne.s32.totalorder %s730_s4, %s559_s3  ;;  %p563_p6 = scmp.lt.u32.totalorder %s559_s3, %s730_s4 }
 0x158   :  { %p565_p7 = pnand %p563_p6, %p560_p5 }
 0x15a   :  { %568 = shalt.err (!%p565_p7)
}
 0x15b   :  { %330 = dma.vmem_to_hbm [thread:$0]  %s328_s2, 16, %s730_s4, [#allocation3]  }
 0x15c   :  { %569 = dma.done.wait [#allocation3], 16  }
 0x15d   :  { %570 = vsyncadd [#allocation3], 4294967280 }
 0x15e   :  { %334 = vsyncpa [#allocation3], 1 }

</bundles_post_ra>
